<compile_context>
chip_gen: v5e
topology: v5e:2x2
jax: 0.10.0
libtpu: 0.0.40
codegen_flags: <defaults>
</compile_context>

<pallas_src>
import functools

import jax
import jax.numpy as jnp
from jax.experimental import pallas as pl
from jax.experimental.pallas import tpu as pltpu

HIDDEN = 64


def _round_up(a, m):
    return (a + m - 1) // m * m


# ----------------------------------------------------------------------------
# Kernel
# ----------------------------------------------------------------------------
def _vae_kernel(features, recon, lay,
                x_ref, xp_ref, eps_ref, w_ref, out_ref):
    """One batch tile of the full VAE forward.  `lay` maps param name ->
    (row_offset, rows, cols) inside the packed weight array; all offsets are
    static Python ints, so the slices below are zero-cost ref views."""

    def W(name):
        off, rows, cols = lay[name]
        return w_ref[off:off + rows, :cols]

    # ---- encoder: Linear -> ReLU -> Linear (f32 MXU accumulation) ----
    x = x_ref[...]
    h = jnp.dot(x, W("ew1"), preferred_element_type=jnp.float32) + W("eb1")
    h = jnp.maximum(h, 0.0)
    enc = jnp.dot(h, W("ew2"), preferred_element_type=jnp.float32) + W("eb2")

    # ---- split mu / log_var and reparameterize (f32 element-wise) ----
    mu = enc[:, :features]
    log_var = enc[:, features:]
    std = jnp.exp(0.5 * log_var)
    z = mu + eps_ref[...] * std

    # ---- decoder: Linear -> ReLU -> Linear -> ReLU -> Linear ----
    # cat([z, xp], -1) @ W1 computed as z @ W1[:F] + xp @ W1[F:] (identical).
    d = (jnp.dot(z, W("dw1z"), preferred_element_type=jnp.float32)
         + jnp.dot(xp_ref[...], W("dw1x"), preferred_element_type=jnp.float32)
         + W("db1"))
    d = jnp.maximum(d, 0.0)
    d = jnp.dot(d, W("dw2"), preferred_element_type=jnp.float32) + W("db2")
    d = jnp.maximum(d, 0.0)
    rec = jnp.dot(d, W("dw3"), preferred_element_type=jnp.float32) + W("db3")

    # ---- single combined output block: [rec | enc] ----
    out_ref[:, :recon] = rec.astype(out_ref.dtype)
    out_ref[:, recon:] = enc.astype(out_ref.dtype)


# ----------------------------------------------------------------------------
# Parameter init / packing
# ----------------------------------------------------------------------------
def init_params(key, features, input_size, extra_decoder_input, reconstruct_size):
    """Init mimicking PyTorch nn.Linear default (U[-1/sqrt(fan_in), +1/sqrt(fan_in)]).

    Weights are stored transposed as [in, out] so the kernel computes x @ W + b.
    The decoder first-layer weight is stored pre-split (dw1z / dw1x) so no
    per-call slicing / concat is needed.  (bf16 weights are a mild DMA/MXU win
    on v6e/v7x only; f32 is used everywhere for v5e compatibility.)
    """
    def linear(k, fan_in, fan_out):
        kw, kb = jax.random.split(k)
        bound = 1.0 / jnp.sqrt(jnp.float32(fan_in))
        w = jax.random.uniform(kw, (fan_in, fan_out), jnp.float32, -bound, bound)
        b = jax.random.uniform(kb, (1, fan_out), jnp.float32, -bound, bound)
        return w, b

    ks = jax.random.split(key, 5)
    ew1, eb1 = linear(ks[0], input_size, HIDDEN)
    ew2, eb2 = linear(ks[1], HIDDEN, 2 * features)
    dw1, db1 = linear(ks[2], features + extra_decoder_input, HIDDEN)
    dw2, db2 = linear(ks[3], HIDDEN, HIDDEN)
    dw3, db3 = linear(ks[4], HIDDEN, reconstruct_size)
    return dict(ew1=ew1, eb1=eb1, ew2=ew2, eb2=eb2,
                dw1z=dw1[:features, :], dw1x=dw1[features:, :], db1=db1,
                dw2=dw2, db2=db2, dw3=dw3, db3=db3)


def pack_params(params):
    """Pack every weight/bias into one (rows, width) f32 array.

    Each segment starts at a multiple-of-8 row offset (sublane aligned) so the
    in-kernel static slices are aligned loads.  Done once at init time; the
    kernel then has a single VMEM-resident parameter DMA stream.
    Returns (packed_array, layout) with layout[name] = (row_offset, rows, cols).
    """
    names = ["ew1", "eb1", "ew2", "eb2", "dw1z", "dw1x", "db1",
             "dw2", "db2", "dw3", "db3"]
    width = max(int(params[n].shape[1]) for n in names)
    layout = {}
    total_rows = 0
    for n in names:
        r, c = int(params[n].shape[0]), int(params[n].shape[1])
        layout[n] = (total_rows, r, c)
        total_rows += _round_up(r, 8)
    packed = jnp.zeros((total_rows, width), jnp.float32)
    for n in names:
        off, r, c = layout[n]
        packed = packed.at[off:off + r, :c].set(params[n].astype(jnp.float32))
    return packed, layout


# ----------------------------------------------------------------------------
# Forward wrapper
# ----------------------------------------------------------------------------
def linear_vae_forward(packed_w, layout, x, xp, eps, features, reconstruct_size,
                       *, max_tile_b=4096):
    B, input_size = x.shape
    extra = xp.shape[1]
    two_f = 2 * features
    out_w = reconstruct_size + two_f

    # Big batch tiles (overhead-bound kernel), but keep the grid at >= 2 steps
    # so v7x megacore can shard batch tiles across its two TensorCores.
    tile_b = max(8, min(max_tile_b, _round_up(pl.cdiv(B, 2), 8)))
    grid = (pl.cdiv(B, tile_b),)

    # Working-set sanity check: far below the 32 MiB default scoped VMEM limit
    # (v7x physical VMEM is 64 MiB).  Double-buffered batch-blocked operands
    # + a few (tile_b, HIDDEN) f32 intermediates + the resident weight pack.
    est_vmem = (2 * tile_b * (input_size + extra + features + out_w) * 4
                + 4 * tile_b * HIDDEN * 4
                + int(packed_w.size) * 4)
    assert est_vmem < (24 << 20), (
        f"tile_b={tile_b} needs ~{est_vmem / 2**20:.1f} MiB VMEM; lower max_tile_b")

    kernel = functools.partial(_vae_kernel, features, reconstruct_size, layout)

    def batch_spec(f):
        return pl.BlockSpec((tile_b, f), lambda i: (i, 0))

    out = pl.pallas_call(
        kernel,
        grid=grid,
        out_shape=jax.ShapeDtypeStruct((B, out_w), jnp.float32),
        in_specs=[
            batch_spec(input_size),            # x
            batch_spec(extra),                 # xp
            batch_spec(features),              # eps
            # Single resident parameter pack (constant index_map -> stays in
            # VMEM across all grid steps, one DMA stream).
            pl.BlockSpec(packed_w.shape, lambda i: (0, 0)),
        ],
        out_specs=batch_spec(out_w),
        compiler_params=pltpu.CompilerParams(
            dimension_semantics=("parallel",)),   # v7x: shard batch over 2 TCs
    )(x, xp, eps, packed_w)

    rec = out[:, :reconstruct_size]
    mu = out[:, reconstruct_size:reconstruct_size + features]
    log_var = out[:, reconstruct_size + features:]
    return rec, mu, log_var


# ----------------------------------------------------------------------------
# Plain-JAX reference (matches the PyTorch forward)
# ----------------------------------------------------------------------------
def reference_forward(params, x, xp, eps, features):
    dw1 = jnp.concatenate([params["dw1z"], params["dw1x"]], axis=0)
    h = jnp.maximum(x @ params["ew1"] + params["eb1"], 0.0)
    enc = h @ params["ew2"] + params["eb2"]
    mu = enc[:, :features]
    log_var = enc[:, features:]
    z = mu + eps * jnp.exp(0.5 * log_var)
    d = jnp.concatenate([z, xp], axis=-1)
    d = jnp.maximum(d @ dw1 + params["db1"], 0.0)
    d = jnp.maximum(d @ params["dw2"] + params["db2"], 0.0)
    rec = d @ params["dw3"] + params["db3"]
    return rec, mu, log_var


if __name__ == "__main__":
    # Small, self-consistent shapes (batch large enough to exercise a 2-step grid).
    B = 512
    FEATURES = 8
    INPUT_SIZE = 16
    EXTRA_DEC = 8
    RECON_SIZE = 16

    key = jax.random.PRNGKey(0)
    k_param, k_x, k_xp, k_eps = jax.random.split(key, 4)

    x = jax.random.normal(k_x, (B, INPUT_SIZE), jnp.float32)
    xp = jax.random.normal(k_xp, (B, EXTRA_DEC), jnp.float32)
    eps = jax.random.normal(k_eps, (B, FEATURES), jnp.float32)  # randn_like(std)

    params = init_params(k_param, FEATURES, INPUT_SIZE, EXTRA_DEC, RECON_SIZE)
    packed_w, layout = pack_params(params)

    # ---- full batch: 2 parallel grid steps, tight correctness check ----
    rec, mu, log_var = linear_vae_forward(packed_w, layout, x, xp, eps,
                                          FEATURES, RECON_SIZE)
    jax.block_until_ready((rec, mu, log_var))

    rec_r, mu_r, lv_r = reference_forward(params, x, xp, eps, FEATURES)
    assert jnp.allclose(rec, rec_r, atol=1e-5, rtol=1e-5)
    assert jnp.allclose(mu, mu_r, atol=1e-5, rtol=1e-5)
    assert jnp.allclose(log_var, lv_r, atol=1e-5, rtol=1e-5)

    # ---- ragged batch: no wrapper-side padding; last block's out-of-range
    # rows are garbage-in/garbage-out (rows independent, never written back) ----
    Bs = 100
    rec_s, mu_s, lv_s = linear_vae_forward(packed_w, layout, x[:Bs], xp[:Bs],
                                           eps[:Bs], FEATURES, RECON_SIZE)
    jax.block_until_ready((rec_s, mu_s, lv_s))
    assert rec_s.shape == (Bs, RECON_SIZE) and mu_s.shape == (Bs, FEATURES)
    assert jnp.allclose(rec_s, rec_r[:Bs], atol=1e-5, rtol=1e-5)
    assert jnp.allclose(mu_s, mu_r[:Bs], atol=1e-5, rtol=1e-5)
    assert jnp.allclose(lv_s, lv_r[:Bs], atol=1e-5, rtol=1e-5)

    # TODO(synk): nn.GRU from __init__ is unused in forward() and is not implemented.
    print("KERNEL_OK")
</pallas_src>

<mosaic_0001>
module attributes {stable_mosaic.version = 11 : i64} {
  func.func @_vae_kernel(%arg0: i32, %arg1: memref<256x16xf32, #tpu.memory_space<vmem>>, %arg2: memref<256x8xf32, #tpu.memory_space<vmem>>, %arg3: memref<256x8xf32, #tpu.memory_space<vmem>>, %arg4: memref<264x64xf32, #tpu.memory_space<vmem>>, %arg5: memref<256x32xf32, #tpu.memory_space<vmem>>) attributes {dimension_semantics = [#tpu.dimension_semantics<parallel>], iteration_bounds = array<i64: 2>, scalar_prefetch = 0 : i64, scratch_operands = 0 : i64, tpu.core_type = #tpu.core_type<tc>, window_params = [{transform_indices = @transform_0, window_bounds = array<i64: 256, 16>}, {transform_indices = @transform_1, window_bounds = array<i64: 256, 8>}, {transform_indices = @transform_2, window_bounds = array<i64: 256, 8>}, {pipeline_mode = #tpu.pipeline_mode<synchronous>, transform_indices = @transform_3, window_bounds = array<i64: 264, 64>}, {transform_indices = @transform_4, window_bounds = array<i64: 256, 32>}]} {
    %c0 = arith.constant 0 : index
    %c0_0 = arith.constant 0 : index
    %0 = vector.load %arg1[%c0, %c0_0] : memref<256x16xf32, #tpu.memory_space<vmem>>, vector<256x16xf32>
    %c0_1 = arith.constant 0 : index
    %c0_2 = arith.constant 0 : index
    %1 = vector.load %arg4[%c0_1, %c0_2] : memref<264x64xf32, #tpu.memory_space<vmem>>, vector<16x64xf32>
    %cst = arith.constant dense<0.000000e+00> : vector<256x64xf32>
    %2 = tpu.matmul %0, %1, %cst {dimension_numbers = #tpu.dot_dimension_numbers<[1], [0], [0], [1], [0, 0, 1, 1], [], []>} : vector<256x16xf32>, vector<16x64xf32>, vector<256x64xf32> -> vector<256x64xf32>
    %c16 = arith.constant 16 : index
    %c0_3 = arith.constant 0 : index
    %3 = vector.load %arg4[%c16, %c0_3] : memref<264x64xf32, #tpu.memory_space<vmem>>, vector<1x64xf32>
    %4 = vector.broadcast %3 : vector<1x64xf32> to vector<256x64xf32>
    %5 = arith.addf %2, %4 : vector<256x64xf32>
    %cst_4 = arith.constant 0.000000e+00 : f32
    %6 = vector.broadcast %cst_4 : f32 to vector<256x64xf32>
    %7 = arith.maximumf %5, %6 : vector<256x64xf32>
    %c24 = arith.constant 24 : index
    %c0_5 = arith.constant 0 : index
    %8 = vector.load %arg4[%c24, %c0_5] : memref<264x64xf32, #tpu.memory_space<vmem>>, vector<64x16xf32>
    %cst_6 = arith.constant dense<0.000000e+00> : vector<256x16xf32>
    %9 = tpu.matmul %7, %8, %cst_6 {dimension_numbers = #tpu.dot_dimension_numbers<[1], [0], [0], [1], [0, 0, 1, 1], [], []>} : vector<256x64xf32>, vector<64x16xf32>, vector<256x16xf32> -> vector<256x16xf32>
    %c88 = arith.constant 88 : index
    %c0_7 = arith.constant 0 : index
    %10 = vector.load %arg4[%c88, %c0_7] : memref<264x64xf32, #tpu.memory_space<vmem>>, vector<1x16xf32>
    %11 = vector.broadcast %10 : vector<1x16xf32> to vector<256x16xf32>
    %12 = arith.addf %9, %11 : vector<256x16xf32>
    %13 = vector.extract_strided_slice %12 {offsets = [0, 0], sizes = [256, 8], strides = [1, 1]} : vector<256x16xf32> to vector<256x8xf32>
    %14 = vector.extract_strided_slice %12 {offsets = [0, 8], sizes = [256, 8], strides = [1, 1]} : vector<256x16xf32> to vector<256x8xf32>
    %cst_8 = arith.constant 5.000000e-01 : f32
    %15 = vector.broadcast %cst_8 : f32 to vector<256x8xf32>
    %16 = arith.mulf %15, %14 : vector<256x8xf32>
    %17 = math.exp %16 : vector<256x8xf32>
    %c0_9 = arith.constant 0 : index
    %c0_10 = arith.constant 0 : index
    %18 = vector.load %arg3[%c0_9, %c0_10] : memref<256x8xf32, #tpu.memory_space<vmem>>, vector<256x8xf32>
    %19 = arith.mulf %18, %17 : vector<256x8xf32>
    %20 = arith.addf %13, %19 : vector<256x8xf32>
    %c96 = arith.constant 96 : index
    %c0_11 = arith.constant 0 : index
    %21 = vector.load %arg4[%c96, %c0_11] : memref<264x64xf32, #tpu.memory_space<vmem>>, vector<8x64xf32>
    %cst_12 = arith.constant dense<0.000000e+00> : vector<256x64xf32>
    %22 = tpu.matmul %20, %21, %cst_12 {dimension_numbers = #tpu.dot_dimension_numbers<[1], [0], [0], [1], [0, 0, 1, 1], [], []>} : vector<256x8xf32>, vector<8x64xf32>, vector<256x64xf32> -> vector<256x64xf32>
    %c0_13 = arith.constant 0 : index
    %c0_14 = arith.constant 0 : index
    %23 = vector.load %arg2[%c0_13, %c0_14] : memref<256x8xf32, #tpu.memory_space<vmem>>, vector<256x8xf32>
    %c104 = arith.constant 104 : index
    %c0_15 = arith.constant 0 : index
    %24 = vector.load %arg4[%c104, %c0_15] : memref<264x64xf32, #tpu.memory_space<vmem>>, vector<8x64xf32>
    %cst_16 = arith.constant dense<0.000000e+00> : vector<256x64xf32>
    %25 = tpu.matmul %23, %24, %cst_16 {dimension_numbers = #tpu.dot_dimension_numbers<[1], [0], [0], [1], [0, 0, 1, 1], [], []>} : vector<256x8xf32>, vector<8x64xf32>, vector<256x64xf32> -> vector<256x64xf32>
    %26 = arith.addf %22, %25 : vector<256x64xf32>
    %c112 = arith.constant 112 : index
    %c0_17 = arith.constant 0 : index
    %27 = vector.load %arg4[%c112, %c0_17] : memref<264x64xf32, #tpu.memory_space<vmem>>, vector<1x64xf32>
    %28 = vector.broadcast %27 : vector<1x64xf32> to vector<256x64xf32>
    %29 = arith.addf %26, %28 : vector<256x64xf32>
    %cst_18 = arith.constant 0.000000e+00 : f32
    %30 = vector.broadcast %cst_18 : f32 to vector<256x64xf32>
    %31 = arith.maximumf %29, %30 : vector<256x64xf32>
    %c120 = arith.constant 120 : index
    %c0_19 = arith.constant 0 : index
    %32 = vector.load %arg4[%c120, %c0_19] : memref<264x64xf32, #tpu.memory_space<vmem>>, vector<64x64xf32>
    %cst_20 = arith.constant dense<0.000000e+00> : vector<256x64xf32>
    %33 = tpu.matmul %31, %32, %cst_20 {dimension_numbers = #tpu.dot_dimension_numbers<[1], [0], [0], [1], [0, 0, 1, 1], [], []>} : vector<256x64xf32>, vector<64x64xf32>, vector<256x64xf32> -> vector<256x64xf32>
    %c184 = arith.constant 184 : index
    %c0_21 = arith.constant 0 : index
    %34 = vector.load %arg4[%c184, %c0_21] : memref<264x64xf32, #tpu.memory_space<vmem>>, vector<1x64xf32>
    %35 = vector.broadcast %34 : vector<1x64xf32> to vector<256x64xf32>
    %36 = arith.addf %33, %35 : vector<256x64xf32>
    %cst_22 = arith.constant 0.000000e+00 : f32
    %37 = vector.broadcast %cst_22 : f32 to vector<256x64xf32>
    %38 = arith.maximumf %36, %37 : vector<256x64xf32>
    %c192 = arith.constant 192 : index
    %c0_23 = arith.constant 0 : index
    %39 = vector.load %arg4[%c192, %c0_23] : memref<264x64xf32, #tpu.memory_space<vmem>>, vector<64x16xf32>
    %cst_24 = arith.constant dense<0.000000e+00> : vector<256x16xf32>
    %40 = tpu.matmul %38, %39, %cst_24 {dimension_numbers = #tpu.dot_dimension_numbers<[1], [0], [0], [1], [0, 0, 1, 1], [], []>} : vector<256x64xf32>, vector<64x16xf32>, vector<256x16xf32> -> vector<256x16xf32>
    %c256 = arith.constant 256 : index
    %c0_25 = arith.constant 0 : index
    %41 = vector.load %arg4[%c256, %c0_25] : memref<264x64xf32, #tpu.memory_space<vmem>>, vector<1x16xf32>
    %42 = vector.broadcast %41 : vector<1x16xf32> to vector<256x16xf32>
    %43 = arith.addf %40, %42 : vector<256x16xf32>
    %c0_26 = arith.constant 0 : index
    %c0_27 = arith.constant 0 : index
    %44 = vector.load %arg5[%c0_26, %c0_27] : memref<256x32xf32, #tpu.memory_space<vmem>>, vector<256x16xf32>
    tpu.vector_store %arg5[%c0_26, %c0_27], %43 {strides = array<i32>} : memref<256x32xf32, #tpu.memory_space<vmem>>, vector<256x16xf32>,
    %c0_28 = arith.constant 0 : index
    %c16_29 = arith.constant 16 : index
    %45 = vector.load %arg5[%c0_28, %c16_29] : memref<256x32xf32, #tpu.memory_space<vmem>>, vector<256x16xf32>
    tpu.vector_store %arg5[%c0_28, %c16_29], %12 {strides = array<i32>} : memref<256x32xf32, #tpu.memory_space<vmem>>, vector<256x16xf32>,
    return
  }
  func.func @transform_0(%arg0: i32) -> (i32, i32) {
    %c0_i32 = arith.constant 0 : i32
    %c0_i32_0 = arith.constant 0 : i32
    return %arg0, %c0_i32 : i32, i32
  }
  func.func @transform_1(%arg0: i32) -> (i32, i32) {
    %c0_i32 = arith.constant 0 : i32
    %c0_i32_0 = arith.constant 0 : i32
    return %arg0, %c0_i32 : i32, i32
  }
  func.func @transform_2(%arg0: i32) -> (i32, i32) {
    %c0_i32 = arith.constant 0 : i32
    %c0_i32_0 = arith.constant 0 : i32
    return %arg0, %c0_i32 : i32, i32
  }
  func.func @transform_3(%arg0: i32) -> (i32, i32) {
    %c0_i32 = arith.constant 0 : i32
    %c0_i32_0 = arith.constant 0 : i32
    %c0_i32_1 = arith.constant 0 : i32
    return %c0_i32, %c0_i32_0 : i32, i32
  }
  func.func @transform_4(%arg0: i32) -> (i32, i32) {
    %c0_i32 = arith.constant 0 : i32
    %c0_i32_0 = arith.constant 0 : i32
    return %arg0, %c0_i32 : i32, i32
  }
}

</mosaic_0001>

<bundles_post_ra>
// kernel: tpu_custom_call.1
= control target key start
LH: loop header
LB: loop body
LE: loop exit
PB: predicated region body
PF: predicated region fallthrough
CT: control target
= control target key end

     0   :  { %s2648_s15 = smov 0   ;;  %s3645_s0 = inlined_call_operand.vmem [shape: f32[512,16], index: 0, kind: input, shape index: {}]   ;;  %s3646_s1 = inlined_call_operand.vmem [shape: f32[512,8], index: 1, kind: input, shape index: {}]   ;;  %s3647_s2 = inlined_call_operand.vmem [shape: f32[512,8], index: 2, kind: input, shape index: {}]   ;;  %s3648_s3 = inlined_call_operand.vmem [shape: f32[264,64], index: 3, kind: input, shape index: {}]   ;;  %s3649_s4 = inlined_call_operand.vmem [shape: f32[512,32], index: 4, kind: output, shape index: {}]  }
   0x1 LB: > { %s2325_s16 = sadd.s32 4294967295, %s2619_s15   ;;  %p2329_p0 = scmp.ge.s32.totalorder %s2619_s15, 1  ;;  %s2619_s15 = sphi %s2648_s15, %s14_s15  }
   0x2   : > { %p185_p1 = scmp.lt.s32.totalorder %s2619_s15, 3 }
   0x4   : > { %p186_p2 = pnand %p2329_p0, %p185_p1 }
   0x5   : > { %s2330_s21 = sshll.u32 (!%p186_p2), %s2325_s16, 5  ;;  %s2622_s28 = smov (!%p186_p2), 16  }
   0x6   : > { %189 = sbr.rel (%p186_p2) target bundleno = 1061 (0x425), region = 36  ;;  %p222_p3 = scmp.lt.s32.totalorder (!%p186_p2), %s2330_s21, 63 }
   0xb   : > { %v278_v0 = vld [vmem:[%s3648_s3 + $0x8] sm:$0xff]  ;;  %v277_v1 = vld [vmem:[%s3648_s3] sm:$0xff]  ;;  %s3651_s21 = smov (!%p222_p3, %s2330_s21), 63  ;;  %vm281_vm0 = vcmask 130048   ;;  %v530_v13 = vld [vmem:[%s3648_s3 + $0x50] sm:$0xff]  ;;  %vm533_vm1 = vcmask 523264  }
   0xc   : > { %392 = vmatpush.msra.mxu0 %v278_v0  ;;  %s2662_s22 = sshll.u32 %s3651_s21, 3  ;;  %v529_v14 = vld [vmem:[%s3648_s3 + $0x48] sm:$0xff]  ;;  %638 = vmatpush.msra.mxu1 %v530_v13  ;;  %v528_v15 = vld [vmem:[%s3648_s3 + $0x40] sm:$0xff]  ;;  %v527_v17 = vld [vmem:[%s3648_s3 + $0x38] sm:$0xff]  ;;  %vm1097_vm2 = vcmask 64512   ;;  %vm2212_vm3 = vcmask 261248  }
   0xd   : > { %s2668_s25 = scalar_lea.vmem %s3645_s0, %s2662_s22  ;;  %v526_v18 = vld [vmem:[%s3648_s3 + $0x30] sm:$0xff]  ;;  %v525_v19 = vld [vmem:[%s3648_s3 + $0x28] sm:$0xff]  ;;  %v524_v21 = vld [vmem:[%s3648_s3 + $0x20] sm:$0xff]  ;;  %s2892_s29 = scalar_lea.vmem %s3646_s1, %s2662_s22 }
   0xe   : > { %393 = vmatpush.msra.mxu0 %v277_v1  ;;  %v245_v2 = vld [vmem:[%s2668_s25] sm:$0xff]  ;;  %v246_v3 = vld [vmem:[%s2668_s25 + $0x8] sm:$0xff]  ;;  %v247_v4 = vld [vmem:[%s2668_s25 + $0x10] sm:$0xff]  ;;  %639 = vmatpush.msra.mxu1 %v529_v14  ;;  %s2943_s8 = scalar_lea.vmem %s3647_s2, %s2662_s22  ;;  %s3449_s27 = scalar_lea.vmem %s3649_s4, %s2662_s22 }
   0xf   : > { %2338 = vmatmul.msk.f32.vlgmr.msra.gmra.mxu0 %vm281_vm0, %v245_v2  ;;  %v248_v5 = vld [vmem:[%s2668_s25 + $0x18] sm:$0xff]  ;;  %v249_v6 = vld [vmem:[%s2668_s25 + $0x20] sm:$0xff]  ;;  %v250_v7 = vld [vmem:[%s2668_s25 + $0x28] sm:$0xff] }
  0x10   : > { %v251_v8 = vld [vmem:[%s2668_s25 + $0x30] sm:$0xff]  ;;  %v252_v9 = vld [vmem:[%s2668_s25 + $0x38] sm:$0xff]  ;;  %v253_v10 = vld [vmem:[%s2668_s25 + $0x40] sm:$0xff]  ;;  %640 = vmatpush.msra.mxu1 %v528_v15 }
  0x11   : > { %v254_v11 = vld [vmem:[%s2668_s25 + $0x48] sm:$0xff]  ;;  %v255_v12 = vld [vmem:[%s2668_s25 + $0x50] sm:$0xff]  ;;  %v256_v16 = vld [vmem:[%s2668_s25 + $0x58] sm:$0xff] }
  0x12   : > { %641 = vmatpush.msra.mxu1 %v527_v17  ;;  %v257_v20 = vld [vmem:[%s2668_s25 + $0x60] sm:$0xff]  ;;  %v523_v22 = vld [vmem:[%s3648_s3 + $0x18] sm:$0xff]  ;;  %v258_v23 = vld [vmem:[%s2668_s25 + $0x68] sm:$0xff] }
  0x13   : > { %v1096_v24 = vld [vmem:[%s3648_s3 + $0x68] sm:$0xff]  ;;  %v1063_v25 = vld [vmem:[%s3648_s3 + $0x60] sm:$0xff]  ;;  %v259_v26 = vld [vmem:[%s2668_s25 + $0x70] sm:$0xff] }
  0x14   : > { %642 = vmatpush.msra.mxu1 %v526_v18  ;;  %1209 = vmatpush.msrb.mxu0 %v1096_v24  ;;  %v260_v27 = vld [vmem:[%s2668_s25 + $0x78] sm:$0xff]  ;;  %v2735_v28 = vld [vmem:[%s3648_s3 + $0x10] ss:$0 sm:$0xff]  ;;  %v261_v30 = vld [vmem:[%s2668_s25 + $0x80] sm:$0xff] }
  0x15   : > { %2532 = vmatpush.msra.mxu2 %v1096_v24  ;;  %2533 = vmatpush.msra.mxu3 %v1063_v25  ;;  %v262_v34 = vld [vmem:[%s2668_s25 + $0x88] sm:$0xff]  ;;  %v263_v38 = vld [vmem:[%s2668_s25 + $0x90] sm:$0xff]  ;;  %v264_v42 = vld [vmem:[%s2668_s25 + $0x98] sm:$0xff] }
  0x16   : > { %643 = vmatpush.msra.mxu1 %v525_v19  ;;  %v265_v46 = vld [vmem:[%s2668_s25 + $0xa0] sm:$0xff]  ;;  %v266_v50 = vld [vmem:[%s2668_s25 + $0xa8] sm:$0xff]  ;;  %v267_v54 = vld [vmem:[%s2668_s25 + $0xb0] sm:$0xff] }
  0x17   : > { %2339 = vmatmul.msk.f32.gmra.mxu0 %vm281_vm0, %v246_v3  ;;  %v268_v58 = vld [vmem:[%s2668_s25 + $0xb8] sm:$0xff]  ;;  %v269_v62 = vld [vmem:[%s2668_s25 + $0xc0] sm:$0xff]  ;;  %v270_v2 = vld [vmem:[%s2668_s25 + $0xc8] sm:$0xff] }
  0x18   : > { %644 = vmatpush.msra.mxu1 %v524_v21  ;;  %v273_v14 = vld [vmem:[%s2668_s25 + $0xe0] sm:$0xff]  ;;  %v274_v18 = vld [vmem:[%s2668_s25 + $0xe8] sm:$0xff] }
  0x1a   : > { %645 = vmatpush.msra.mxu1 %v523_v22  ;;  %v275_v22 = vld [vmem:[%s2668_s25 + $0xf0] sm:$0xff] }
  0x1c   : > { %1418 = vmatpush.msrb.mxu1 %v1063_v25 }
  0x1f   : > { %2340 = vmatmul.msk.f32.gmra.mxu0 %vm281_vm0, %v247_v4 }
  0x27   : > { %2341 = vmatmul.msk.f32.gmra.mxu0 %vm281_vm0, %v248_v5 }
  0x2f   : > { %2342 = vmatmul.msk.f32.gmra.mxu0 %vm281_vm0, %v249_v6  ;;  %v271_v6 = vld [vmem:[%s2668_s25 + $0xd0] sm:$0xff] }
  0x37   : > { %2343 = vmatmul.msk.f32.gmra.mxu0 %vm281_vm0, %v250_v7 }
  0x3f   : > { %2344 = vmatmul.msk.f32.gmra.mxu0 %vm281_vm0, %v251_v8 }
  0x47   : > { %2345 = vmatmul.msk.f32.gmra.mxu0 %vm281_vm0, %v252_v9 }
  0x4f   : > { %2346 = vmatmul.msk.f32.gmra.mxu0 %vm281_vm0, %v253_v10  ;;  %v272_v10 = vld [vmem:[%s2668_s25 + $0xd8] sm:$0xff] }
  0x57   : > { %2347 = vmatmul.msk.f32.gmra.mxu0 %vm281_vm0, %v254_v11 }
  0x5f   : > { %2348 = vmatmul.msk.f32.gmra.mxu0 %vm281_vm0, %v255_v12 }
  0x67   : > { %2349 = vmatmul.msk.f32.gmra.mxu0 %vm281_vm0, %v256_v16 }
  0x6f   : > { %2350 = vmatmul.msk.f32.gmra.mxu0 %vm281_vm0, %v257_v20 }
  0x77   : > { %2351 = vmatmul.msk.f32.gmra.mxu0 %vm281_vm0, %v258_v23 }
  0x7f   : > { %2352 = vmatmul.msk.f32.gmra.mxu0 %vm281_vm0, %v259_v26  ;;  %v276_v26 = vld [vmem:[%s2668_s25 + $0xf8] sm:$0xff]  ;;  %s2621_s25 = smov 120  }
  0x87   : > { %2353 = vmatmul.msk.f32.gmra.mxu0 %vm281_vm0, %v260_v27 }
  0x8c   : > { %v395_v29 = vpop.f32.mrf.mxu0 }
  0x8d   : > { %v396_v31 = vadd.f32 %v2735_v28, %v395_v29 }
  0x8f   : > { %v491_v32 = vmax.f32 %v396_v31, 0.0  ;;  %2354 = vmatmul.msk.f32.gmra.mxu0 %vm281_vm0, %v261_v30  ;;  %v2804_v30 = vld [vmem:[%s3648_s3 + $0x58] ss:$0 sm:$0xff] }
  0x91   : > { %2370 = vmatmul.msk.f32.vlgmr.msra.gmra.mxu1 %vm533_vm1, %v491_v32 }
  0x94   : > { %v398_v33 = vpop.f32.mrf.mxu0 }
  0x95   : > { %v399_v35 = vadd.f32 %v2735_v28, %v398_v33 }
  0x97   : > { %v492_v36 = vmax.f32 %v399_v35, 0.0  ;;  %2355 = vmatmul.msk.f32.gmra.mxu0 %vm281_vm0, %v262_v34 }
  0x99   : > { %2371 = vmatmul.msk.f32.gmra.mxu1 %vm533_vm1, %v492_v36 }
  0x9c   : > { %v401_v37 = vpop.f32.mrf.mxu0 }
  0x9d   : > { %v402_v39 = vadd.f32 %v2735_v28, %v401_v37 }
  0x9f   : > { %v493_v40 = vmax.f32 %v402_v39, 0.0  ;;  %2356 = vmatmul.msk.f32.gmra.mxu0 %vm281_vm0, %v263_v38 }
  0xa1   : > { %2372 = vmatmul.msk.f32.gmra.mxu1 %vm533_vm1, %v493_v40 }
  0xa4   : > { %v404_v41 = vpop.f32.mrf.mxu0 }
  0xa5   : > { %v405_v43 = vadd.f32 %v2735_v28, %v404_v41 }
  0xa7   : > { %v494_v44 = vmax.f32 %v405_v43, 0.0  ;;  %2357 = vmatmul.msk.f32.gmra.mxu0 %vm281_vm0, %v264_v42 }
  0xa9   : > { %2373 = vmatmul.msk.f32.gmra.mxu1 %vm533_vm1, %v494_v44 }
  0xac   : > { %v407_v45 = vpop.f32.mrf.mxu0 }
  0xad   : > { %v408_v47 = vadd.f32 %v2735_v28, %v407_v45 }
  0xaf   : > { %v495_v48 = vmax.f32 %v408_v47, 0.0  ;;  %2358 = vmatmul.msk.f32.gmra.mxu0 %vm281_vm0, %v265_v46 }
  0xb1   : > { %2374 = vmatmul.msk.f32.gmra.mxu1 %vm533_vm1, %v495_v48 }
  0xb4   : > { %v410_v49 = vpop.f32.mrf.mxu0 }
  0xb5   : > { %v411_v51 = vadd.f32 %v2735_v28, %v410_v49 }
  0xb7   : > { %v496_v52 = vmax.f32 %v411_v51, 0.0  ;;  %2359 = vmatmul.msk.f32.gmra.mxu0 %vm281_vm0, %v266_v50 }
  0xb9   : > { %2375 = vmatmul.msk.f32.gmra.mxu1 %vm533_vm1, %v496_v52 }
  0xbc   : > { %v413_v53 = vpop.f32.mrf.mxu0 }
  0xbd   : > { %v414_v55 = vadd.f32 %v2735_v28, %v413_v53 }
  0xbf   : > { %v497_v56 = vmax.f32 %v414_v55, 0.0  ;;  %2360 = vmatmul.msk.f32.gmra.mxu0 %vm281_vm0, %v267_v54 }
  0xc1   : > { %2376 = vmatmul.msk.f32.gmra.mxu1 %vm533_vm1, %v497_v56 }
  0xc4   : > { %v416_v57 = vpop.f32.mrf.mxu0 }
  0xc5   : > { %v417_v59 = vadd.f32 %v2735_v28, %v416_v57 }
  0xc7   : > { %v498_v60 = vmax.f32 %v417_v59, 0.0  ;;  %2361 = vmatmul.msk.f32.gmra.mxu0 %vm281_vm0, %v268_v58 }
  0xc9   : > { %2377 = vmatmul.msk.f32.gmra.mxu1 %vm533_vm1, %v498_v60 }
  0xcc   : > { %v419_v61 = vpop.f32.mrf.mxu0 }
  0xcd   : > { %v420_v63 = vadd.f32 %v2735_v28, %v419_v61 }
  0xcf   : > { %v499_v0 = vmax.f32 %v420_v63, 0.0  ;;  %2362 = vmatmul.msk.f32.gmra.mxu0 %vm281_vm0, %v269_v62 }
  0xd1   : > { %2378 = vmatmul.msk.f32.gmra.mxu1 %vm533_vm1, %v499_v0 }
  0xd4   : > { %v422_v1 = vpop.f32.mrf.mxu0 }
  0xd5   : > { %v423_v3 = vadd.f32 %v2735_v28, %v422_v1 }
  0xd7   : > { %v500_v4 = vmax.f32 %v423_v3, 0.0  ;;  %2363 = vmatmul.msk.f32.gmra.mxu0 %vm281_vm0, %v270_v2 }
  0xd9   : > { %2379 = vmatmul.msk.f32.gmra.mxu1 %vm533_vm1, %v500_v4 }
  0xdc   : > { %v425_v5 = vpop.f32.mrf.mxu0 }
  0xdd   : > { %v426_v7 = vadd.f32 %v2735_v28, %v425_v5 }
  0xdf   : > { %v501_v8 = vmax.f32 %v426_v7, 0.0  ;;  %2364 = vmatmul.msk.f32.gmra.mxu0 %vm281_vm0, %v271_v6 }
  0xe1   : > { %2380 = vmatmul.msk.f32.gmra.mxu1 %vm533_vm1, %v501_v8 }
  0xe4   : > { %v428_v9 = vpop.f32.mrf.mxu0 }
  0xe5   : > { %v429_v11 = vadd.f32 %v2735_v28, %v428_v9 }
  0xe7   : > { %v502_v12 = vmax.f32 %v429_v11, 0.0  ;;  %2365 = vmatmul.msk.f32.gmra.mxu0 %vm281_vm0, %v272_v10 }
  0xe9   : > { %2381 = vmatmul.msk.f32.gmra.mxu1 %vm533_vm1, %v502_v12 }
  0xec   : > { %v431_v13 = vpop.f32.mrf.mxu0 }
  0xed   : > { %v432_v15 = vadd.f32 %v2735_v28, %v431_v13 }
  0xef   : > { %v503_v16 = vmax.f32 %v432_v15, 0.0  ;;  %2366 = vmatmul.msk.f32.gmra.mxu0 %vm281_vm0, %v273_v14 }
  0xf1   : > { %2382 = vmatmul.msk.f32.gmra.mxu1 %vm533_vm1, %v503_v16 }
  0xf4   : > { %v434_v17 = vpop.f32.mrf.mxu0 }
  0xf5   : > { %v435_v19 = vadd.f32 %v2735_v28, %v434_v17 }
  0xf7   : > { %v504_v20 = vmax.f32 %v435_v19, 0.0  ;;  %2367 = vmatmul.msk.f32.gmra.mxu0 %vm281_vm0, %v274_v18 }
  0xf9   : > { %2383 = vmatmul.msk.f32.gmra.mxu1 %vm533_vm1, %v504_v20 }
  0xfc   : > { %v437_v21 = vpop.f32.mrf.mxu0 }
  0xfd   : > { %v438_v23 = vadd.f32 %v2735_v28, %v437_v21 }
  0xff   : > { %v505_v24 = vmax.f32 %v438_v23, 0.0  ;;  %2368 = vmatmul.msk.f32.gmra.mxu0 %vm281_vm0, %v275_v22 }
 0x101   : > { %2384 = vmatmul.msk.f32.gmra.mxu1 %vm533_vm1, %v505_v24 }
 0x104   : > { %v440_v25 = vpop.f32.mrf.mxu0 }
 0x105   : > { %v441_v27 = vadd.f32 %v2735_v28, %v440_v25 }
 0x107   : > { %v506_v29 = vmax.f32 %v441_v27, 0.0  ;;  %2369 = vmatmul.msk.f32.gmra.mxu0 %vm281_vm0, %v276_v26 }
 0x109   : > { %2385 = vmatmul.msk.f32.gmra.mxu1 %vm533_vm1, %v506_v29 }
 0x10c   : > { %v443_v31 = vpop.f32.mrf.mxu0 }
 0x10d   : > { %v444_v32 = vadd.f32 %v2735_v28, %v443_v31 }
 0x10e   : > { %v647_v33 = vpop.f32.mrf.mxu1 }
 0x10f   : > { %v507_v34 = vmax.f32 %v444_v32, 0.0  ;;  %v2808_v35 = vadd.f32 %v2804_v30, %v647_v33 }
 0x111   : > { %v743_v36 = vmul.f32 0.5, %v2808_v35  ;;  %2386 = vmatmul.msk.f32.gmra.mxu1 %vm533_vm1, %v507_v34 }
 0x113   : > { %v775_v37 = vmul.f32 1.442695, %v743_v36 }
 0x114   : > { %v446_v38 = vpop.f32.mrf.mxu0 }
 0x115   : > { %v447_v39 = vadd.f32 %v2735_v28, %v446_v38  ;;  %2549 = vpow2.f32 %v775_v37 }
 0x116   : > { %v650_v40 = vpop.f32.mrf.mxu1 }
 0x117   : > { %v508_v41 = vmax.f32 %v447_v39, 0.0  ;;  %v2814_v42 = vadd.f32 %v2804_v30, %v650_v40 }
 0x119   : > { %v744_v43 = vmul.f32 0.5, %v2814_v42  ;;  %2387 = vmatmul.msk.f32.gmra.mxu1 %vm533_vm1, %v508_v41 }
 0x11b   : > { %v2550_v44 = vpop.eup %2549  ;;  %v777_v45 = vmul.f32 1.442695, %v744_v43 }
 0x11c   : > { %v449_v46 = vpop.f32.mrf.mxu0  ;;  %903 = vrot.lane.b32.xlu0 %v2550_v44, %s2621_s25 }
 0x11d   : > { %2551 = vpow2.f32 %v777_v45  ;;  %v450_v47 = vadd.f32 %v2735_v28, %v449_v46 }
 0x11e   : > { %v653_v48 = vpop.f32.mrf.mxu1 }
 0x11f   : > { %v509_v49 = vmax.f32 %v450_v47, 0.0  ;;  %v2821_v50 = vadd.f32 %v2804_v30, %v653_v48 }
 0x121   : > { %v745_v51 = vmul.f32 0.5, %v2821_v50  ;;  %2388 = vmatmul.msk.f32.gmra.mxu1 %vm533_vm1, %v509_v49 }
 0x123   : > { %v2552_v52 = vpop.eup %2551  ;;  %v779_v53 = vmul.f32 1.442695, %v745_v51 }
 0x124   : > { %v452_v54 = vpop.f32.mrf.mxu0  ;;  %905 = vrot.lane.b32.xlu0 %v2552_v52, %s2621_s25 }
 0x125   : > { %v453_v55 = vadd.f32 %v2735_v28, %v452_v54  ;;  %2553 = vpow2.f32 %v779_v53 }
 0x126   : > { %v656_v56 = vpop.f32.mrf.mxu1 }
 0x127   : > { %v510_v57 = vmax.f32 %v453_v55, 0.0  ;;  %v2828_v58 = vadd.f32 %v2804_v30, %v656_v56 }
 0x129   : > { %v746_v59 = vmul.f32 0.5, %v2828_v58  ;;  %2389 = vmatmul.msk.f32.gmra.mxu1 %vm533_vm1, %v510_v57 }
 0x12b   : > { %v2554_v60 = vpop.eup %2553  ;;  %v781_v61 = vmul.f32 1.442695, %v746_v59 }
 0x12c   : > { %v455_v62 = vpop.f32.mrf.mxu0  ;;  %907 = vrot.lane.b32.xlu1 %v2554_v60, %s2621_s25 }
 0x12d   : > { %2555 = vpow2.f32 %v781_v61  ;;  %v456_v63 = vadd.f32 %v2735_v28, %v455_v62 }
 0x12e   : > { %v659_v0 = vpop.f32.mrf.mxu1 }
 0x12f   : > { %v511_v1 = vmax.f32 %v456_v63, 0.0  ;;  %v2835_v2 = vadd.f32 %v2804_v30, %v659_v0 }
 0x131   : > { %v747_v3 = vmul.f32 0.5, %v2835_v2  ;;  %2390 = vmatmul.msk.f32.gmra.mxu1 %vm533_vm1, %v511_v1 }
 0x133   : > { %v2556_v4 = vpop.eup %2555  ;;  %v783_v5 = vmul.f32 1.442695, %v747_v3 }
 0x134   : > { %v458_v6 = vpop.f32.mrf.mxu0  ;;  %909 = vrot.lane.b32.xlu1 %v2556_v4, %s2621_s25 }
 0x135   : > { %v459_v7 = vadd.f32 %v2735_v28, %v458_v6  ;;  %2557 = vpow2.f32 %v783_v5 }
 0x136   : > { %v662_v8 = vpop.f32.mrf.mxu1 }
 0x137   : > { %v512_v9 = vmax.f32 %v459_v7, 0.0  ;;  %v2842_v10 = vadd.f32 %v2804_v30, %v662_v8  ;;  %v1079_v8 = vld [vmem:[%s2892_s29 + $0x78] sm:$0xff] }
 0x138   : > { %2417 = vmatmul.msk.f32.vlgmr.msra.gmra.mxu2 %vm1097_vm2, %v1079_v8 }
 0x139   : > { %v748_v11 = vmul.f32 0.5, %v2842_v10  ;;  %2391 = vmatmul.msk.f32.gmra.mxu1 %vm533_vm1, %v512_v9 }
 0x13b   : > { %v2558_v12 = vpop.eup %2557  ;;  %v785_v13 = vmul.f32 1.442695, %v748_v11 }
 0x13c   : > { %v461_v14 = vpop.f32.mrf.mxu0  ;;  %911 = vrot.lane.b32.xlu2 %v2558_v12, %s2621_s25 }
 0x13d   : > { %2559 = vpow2.f32 %v785_v13  ;;  %v462_v15 = vadd.f32 %v2735_v28, %v461_v14  ;;  %v1064_v13 = vld [vmem:[%s2892_s29] sm:$0xff] }
 0x13e   : > { %v665_v16 = vpop.f32.mrf.mxu1  ;;  %2402 = vmatmul.msk.f32.vlgmr.msrb.gmra.mxu0 %vm1097_vm2, %v1064_v13  ;;  %v1084_v13 = vld [vmem:[%s2892_s29 + $0xa0] sm:$0xff] }
 0x13f   : > { %v513_v17 = vmax.f32 %v462_v15, 0.0  ;;  %v2849_v18 = vadd.f32 %v2804_v30, %v665_v16 }
 0x141   : > { %v749_v19 = vmul.f32 0.5, %v2849_v18  ;;  %2392 = vmatmul.msk.f32.gmra.mxu1 %vm533_vm1, %v513_v17 }
 0x143   : > { %v2560_v20 = vpop.eup %2559  ;;  %v787_v21 = vmul.f32 1.442695, %v749_v19  ;;  %v1589_v19 = vld [vmem:[%s3648_s3 + $0xb0] sm:$0xff] }
 0x144   : > { %v464_v22 = vpop.f32.mrf.mxu0  ;;  %913 = vrot.lane.b32.xlu2 %v2560_v20, %s2621_s25  ;;  %1696 = vmatpush.msrb.mxu2 %v1589_v19 }
 0x145   : > { %2561 = vpow2.f32 %v787_v21  ;;  %v465_v23 = vadd.f32 %v2735_v28, %v464_v22 }
 0x146   : > { %v668_v24 = vpop.f32.mrf.mxu1 }
 0x147   : > { %v514_v25 = vmax.f32 %v465_v23, 0.0  ;;  %v2856_v26 = vadd.f32 %v2804_v30, %v668_v24  ;;  %v1080_v23 = vld [vmem:[%s2892_s29 + $0x80] sm:$0xff] }
 0x148   : > { %2418 = vmatmul.msk.f32.gmra.mxu2 %vm1097_vm2, %v1080_v23  ;;  %v1587_v23 = vld [vmem:[%s3648_s3 + $0xa0] sm:$0xff] }
 0x149   : > { %v750_v27 = vmul.f32 0.5, %v2856_v26  ;;  %2393 = vmatmul.msk.f32.gmra.mxu1 %vm533_vm1, %v514_v25 }
 0x14b   : > { %v2562_v29 = vpop.eup %2561  ;;  %v789_v31 = vmul.f32 1.442695, %v750_v27 }
 0x14c   : > { %v467_v32 = vpop.f32.mrf.mxu0  ;;  %915 = vrot.lane.b32.xlu0 %v2562_v29, %s2621_s25  ;;  %v1065_v29 = vld [vmem:[%s2892_s29 + $0x8] sm:$0xff] }
 0x14d   : > { %2563 = vpow2.f32 %v789_v31  ;;  %v468_v33 = vadd.f32 %v2735_v28, %v467_v32  ;;  %2403 = vmatmul.msk.f32.gmra.mxu0 %vm1097_vm2, %v1065_v29  ;;  %v1085_v29 = vld [vmem:[%s2892_s29 + $0xa8] sm:$0xff] }
 0x14e   : > { %v671_v34 = vpop.f32.mrf.mxu1 }
 0x14f   : > { %v515_v36 = vmax.f32 %v468_v33, 0.0  ;;  %v2863_v37 = vadd.f32 %v2804_v30, %v671_v34 }
 0x151   : > { %v751_v38 = vmul.f32 0.5, %v2863_v37  ;;  %2394 = vmatmul.msk.f32.gmra.mxu1 %vm533_vm1, %v515_v36 }
 0x153   : > { %v2564_v39 = vpop.eup %2563  ;;  %v791_v40 = vmul.f32 1.442695, %v751_v38  ;;  %v1081_v38 = vld [vmem:[%s2892_s29 + $0x88] sm:$0xff] }
 0x154   : > { %v470_v41 = vpop.f32.mrf.mxu0  ;;  %917 = vrot.lane.b32.xlu1 %v2564_v39, %s2621_s25  ;;  %2419 = vmatmul.msk.f32.gmra.mxu2 %vm1097_vm2, %v1081_v38 }
 0x155   : > { %2565 = vpow2.f32 %v791_v40  ;;  %v471_v43 = vadd.f32 %v2735_v28, %v470_v41 }
 0x156   : > { %v674_v44 = vpop.f32.mrf.mxu1 }
 0x157   : > { %v516_v45 = vmax.f32 %v471_v43, 0.0  ;;  %v2870_v46 = vadd.f32 %v2804_v30, %v674_v44  ;;  %v1066_v43 = vld [vmem:[%s2892_s29 + $0x10] sm:$0xff] }
 0x158   : > { %2404 = vmatmul.msk.f32.gmra.mxu0 %vm1097_vm2, %v1066_v43 }
 0x159   : > { %v752_v47 = vmul.f32 0.5, %v2870_v46  ;;  %2395 = vmatmul.msk.f32.gmra.mxu1 %vm533_vm1, %v516_v45 }
 0x15b   : > { %v2566_v48 = vpop.eup %2565  ;;  %v793_v49 = vmul.f32 1.442695, %v752_v47 }
 0x15c   : > { %v473_v51 = vpop.f32.mrf.mxu0  ;;  %919 = vrot.lane.b32.xlu2 %v2566_v48, %s2621_s25 }
 0x15d   : > { %2567 = vpow2.f32 %v793_v49  ;;  %v474_v52 = vadd.f32 %v2735_v28, %v473_v51  ;;  %v1082_v51 = vld [vmem:[%s2892_s29 + $0x90] sm:$0xff] }
 0x15e   : > { %v677_v53 = vpop.f32.mrf.mxu1  ;;  %2420 = vmatmul.msk.f32.gmra.mxu2 %vm1097_vm2, %v1082_v51 }
 0x15f   : > { %v517_v54 = vmax.f32 %v474_v52, 0.0  ;;  %v2877_v55 = vadd.f32 %v2804_v30, %v677_v53 }
 0x161   : > { %v753_v56 = vmul.f32 0.5, %v2877_v55  ;;  %2396 = vmatmul.msk.f32.gmra.mxu1 %vm533_vm1, %v517_v54  ;;  %v1067_v54 = vld [vmem:[%s2892_s29 + $0x18] sm:$0xff] }
 0x162   : > { %2405 = vmatmul.msk.f32.gmra.mxu0 %vm1097_vm2, %v1067_v54 }
 0x163   : > { %v2568_v57 = vpop.eup %2567  ;;  %v795_v59 = vmul.f32 1.442695, %v753_v56  ;;  %v839_v56 = vld [vmem:[%s2943_s8] sm:$0xff] }
 0x164   : > { %v476_v60 = vpop.f32.mrf.mxu0  ;;  %921 = vrot.lane.b32.xlu0 %v2568_v57, %s2621_s25  ;;  %v1588_v57 = vld [vmem:[%s3648_s3 + $0xa8] sm:$0xff] }
 0x165   : > { %2569 = vpow2.f32 %v795_v59  ;;  %v477_v61 = vadd.f32 %v2735_v28, %v476_v60  ;;  %1697 = vmatpush.msrb.mxu2 %v1588_v57  ;;  %v1586_v57 = vld [vmem:[%s3648_s3 + $0x98] sm:$0xff] }
 0x166   : > { %v680_v62 = vpop.f32.mrf.mxu1 }
 0x167   : > { %v518_v63 = vmax.f32 %v477_v61, 0.0  ;;  %v2884_v0 = vadd.f32 %v2804_v30, %v680_v62  ;;  %1698 = vmatpush.msrb.mxu2 %v1587_v23  ;;  %v845_v23 = vld [vmem:[%s2943_s8 + $0x30] sm:$0xff] }
 0x169   : > { %v754_v1 = vmul.f32 0.5, %v2884_v0  ;;  %2397 = vmatmul.msk.f32.gmra.mxu1 %vm533_vm1, %v518_v63  ;;  %v1083_v63 = vld [vmem:[%s2892_s29 + $0x98] sm:$0xff]  ;;  %1699 = vmatpush.msrb.mxu2 %v1586_v57 }
 0x16a   : > { %2421 = vmatmul.msk.f32.gmra.mxu2 %vm1097_vm2, %v1083_v63  ;;  %v1087_v63 = vld [vmem:[%s2892_s29 + $0xb8] sm:$0xff] }
 0x16b   : > { %v2570_v3 = vpop.eup %2569  ;;  %v797_v4 = vmul.f32 1.442695, %v754_v1 }
 0x16c   : > { %v479_v5 = vpop.f32.mrf.mxu0  ;;  %923 = vrot.lane.b32.xlu1 %v2570_v3, %s2621_s25 }
 0x16d   : > { %2571 = vpow2.f32 %v797_v4  ;;  %v480_v6 = vadd.f32 %v2735_v28, %v479_v5 }
 0x16e   : > { %v683_v7 = vpop.f32.mrf.mxu1 }
 0x16f   : > { %v519_v9 = vmax.f32 %v480_v6, 0.0  ;;  %v2898_v11 = vadd.f32 %v2804_v30, %v683_v7  ;;  %v1068_v6 = vld [vmem:[%s2892_s29 + $0x20] sm:$0xff]  ;;  %v840_v7 = vld [vmem:[%s2943_s8 + $0x8] sm:$0xff] }
 0x170   : > { %2406 = vmatmul.msk.f32.gmra.mxu0 %vm1097_vm2, %v1068_v6 }
 0x171   : > { %v755_v12 = vmul.f32 0.5, %v2898_v11  ;;  %2398 = vmatmul.msk.f32.gmra.mxu1 %vm533_vm1, %v519_v9 }
 0x172   : > { %2422 = vmatmul.msk.f32.gmra.mxu2 %vm1097_vm2, %v1084_v13 }
 0x173   : > { %v2572_v14 = vpop.eup %2571  ;;  %v799_v15 = vmul.f32 1.442695, %v755_v12 }
 0x174   : > { %v482_v16 = vpop.f32.mrf.mxu0  ;;  %925 = vrot.lane.b32.xlu2 %v2572_v14, %s2621_s25 }
 0x175   : > { %2573 = vpow2.f32 %v799_v15  ;;  %v483_v17 = vadd.f32 %v2735_v28, %v482_v16 }
 0x176   : > { %v686_v20 = vpop.f32.mrf.mxu1 }
 0x177   : > { %v520_v21 = vmax.f32 %v483_v17, 0.0  ;;  %v2911_v22 = vadd.f32 %v2804_v30, %v686_v20  ;;  %v1069_v20 = vld [vmem:[%s2892_s29 + $0x28] sm:$0xff] }
 0x178   : > { %2407 = vmatmul.msk.f32.gmra.mxu0 %vm1097_vm2, %v1069_v20 }
 0x179   : > { %v756_v24 = vmul.f32 0.5, %v2911_v22  ;;  %2399 = vmatmul.msk.f32.gmra.mxu1 %vm533_vm1, %v520_v21  ;;  %v841_v21 = vld [vmem:[%s2943_s8 + $0x10] sm:$0xff] }
 0x17a   : > { %2423 = vmatmul.msk.f32.gmra.mxu2 %vm1097_vm2, %v1085_v29 }
 0x17b   : > { %v2574_v25 = vpop.eup %2573  ;;  %v801_v27 = vmul.f32 1.442695, %v756_v24 }
 0x17c   : > { %v485_v31 = vpop.f32.mrf.mxu0  ;;  %927 = vrot.lane.b32.xlu0 %v2574_v25, %s2621_s25 }
 0x17d   : > { %2575 = vpow2.f32 %v801_v27  ;;  %v486_v32 = vadd.f32 %v2735_v28, %v485_v31 }
 0x17e   : > { %v689_v33 = vpop.f32.mrf.mxu1 }
 0x17f   : > { %v521_v34 = vmax.f32 %v486_v32, 0.0  ;;  %v2922_v36 = vadd.f32 %v2804_v30, %v689_v33 }
 0x181   : > { %v757_v39 = vmul.f32 0.5, %v2922_v36  ;;  %2400 = vmatmul.msk.f32.gmra.mxu1 %vm533_vm1, %v521_v34 }
 0x183   : > { %v2576_v40 = vpop.eup %2575  ;;  %v803_v41 = vmul.f32 1.442695, %v757_v39  ;;  %v1070_v39 = vld [vmem:[%s2892_s29 + $0x30] sm:$0xff] }
 0x184   : > { %v488_v44 = vpop.f32.mrf.mxu0  ;;  %929 = vrot.lane.b32.xlu1 %v2576_v40, %s2621_s25  ;;  %v842_v40 = vld [vmem:[%s2943_s8 + $0x18] sm:$0xff]  ;;  %2408 = vmatmul.msk.f32.gmra.mxu0 %vm1097_vm2, %v1070_v39 }
 0x185   : > { %2577 = vpow2.f32 %v803_v41  ;;  %v489_v45 = vadd.f32 %v2735_v28, %v488_v44 }
 0x186   : > { %v692_v47 = vpop.f32.mrf.mxu1 }
 0x187   : > { %v522_v48 = vmax.f32 %v489_v45, 0.0  ;;  %v2933_v49 = vadd.f32 %v2804_v30, %v692_v47  ;;  %v1086_v45 = vld [vmem:[%s2892_s29 + $0xb0] sm:$0xff] }
 0x188   : > { %2424 = vmatmul.msk.f32.gmra.mxu2 %vm1097_vm2, %v1086_v45 }
 0x189   : > { %v758_v52 = vmul.f32 0.5, %v2933_v49  ;;  %2401 = vmatmul.msk.f32.gmra.mxu1 %vm533_vm1, %v522_v48 }
 0x18b   : > { %v2578_v28 = vpop.eup %2577  ;;  %v805_v53 = vmul.f32 1.442695, %v758_v52 }
 0x18c   : > { %931 = vrot.lane.b32.xlu2 %v2578_v28, %s2621_s25 }
 0x18d   : > { %2579 = vpow2.f32 %v805_v53  ;;  %v843_v53 = vld [vmem:[%s2943_s8 + $0x20] sm:$0xff] }
 0x18e   : > { %v695_v59 = vpop.f32.mrf.mxu1  ;;  %v904_v60 = vpop.permute.xlu0 %903 }
 0x18f   : > { %v2953_v61 = vadd.f32 %v2804_v30, %v695_v59  ;;  %v999_v62 = vmul.f32 %v904_v60, %v839_v56  ;;  %v1071_v56 = vld [vmem:[%s2892_s29 + $0x38] sm:$0xff] }
 0x190   : > { %2409 = vmatmul.msk.f32.gmra.mxu0 %vm1097_vm2, %v1071_v56  ;;  %2425 = vmatmul.msk.f32.gmra.mxu2 %vm1097_vm2, %v1087_v63  ;;  %v847_v56 = vld [vmem:[%s2943_s8 + $0x40] sm:$0xff]  ;;  %v1584_v63 = vld [vmem:[%s3648_s3 + $0x88] sm:$0xff] }
 0x191   : > { %v759_v1 = vmul.f32 0.5, %v2953_v61  ;;  %v1031_v3 = vadd.f32 %v999_v62, %v2808_v35 }
 0x193   : > { %v2580_v4 = vpop.eup %2579  ;;  %v807_v5 = vmul.f32 1.442695, %v759_v1  ;;  %2434 = vmatmul.msk.f32.vlgmr.msrb.gmra.mxu1 %vm1097_vm2, %v1031_v3 }
 0x194   : > { %933 = vrot.lane.b32.xlu0 %v2580_v4, %s2621_s25 }
 0x195   : > { %2581 = vpow2.f32 %v807_v5  ;;  %v844_v5 = vld [vmem:[%s2943_s8 + $0x28] sm:$0xff] }
 0x196   : > { %v698_v8 = vpop.f32.mrf.mxu1  ;;  %v906_v12 = vpop.permute.xlu0 %905 }
 0x197   : > { %v2965_v9 = vadd.f32 %v2804_v30, %v698_v8  ;;  %v1000_v14 = vmul.f32 %v906_v12, %v840_v7  ;;  %v912_v48 = vpop.permute.xlu2 %911  ;;  %v1072_v8 = vld [vmem:[%s2892_s29 + $0x40] sm:$0xff] }
 0x198   : > { %v1003_v59 = vmul.f32 %v912_v48, %v843_v53  ;;  %2410 = vmatmul.msk.f32.gmra.mxu0 %vm1097_vm2, %v1072_v8 }
 0x199   : > { %v760_v15 = vmul.f32 0.5, %v2965_v9  ;;  %v1032_v16 = vadd.f32 %v1000_v14, %v2814_v42 }
 0x19a   : > { %v1035_v3 = vadd.f32 %v1003_v59, %v2835_v2 }
 0x19b   : > { %v2582_v17 = vpop.eup %2581  ;;  %v809_v19 = vmul.f32 1.442695, %v760_v15  ;;  %2435 = vmatmul.msk.f32.gmra.mxu1 %vm1097_vm2, %v1032_v16  ;;  %v1088_v15 = vld [vmem:[%s2892_s29 + $0xc0] sm:$0xff] }
 0x19c   : > { %935 = vrot.lane.b32.xlu1 %v2582_v17, %s2621_s25  ;;  %2426 = vmatmul.msk.f32.gmra.mxu2 %vm1097_vm2, %v1088_v15  ;;  %v848_v15 = vld [vmem:[%s2943_s8 + $0x48] sm:$0xff] }
 0x19d   : > { %2583 = vpow2.f32 %v809_v19 }
 0x19e   : > { %v701_v24 = vpop.f32.mrf.mxu1  ;;  %v908_v27 = vpop.permute.xlu1 %907 }
 0x19f   : > { %v2980_v25 = vadd.f32 %v2804_v30, %v701_v24  ;;  %v1001_v31 = vmul.f32 %v908_v27, %v841_v21  ;;  %v914_v6 = vpop.permute.xlu2 %913  ;;  %v1073_v21 = vld [vmem:[%s2892_s29 + $0x48] sm:$0xff]  ;;  %v1585_v24 = vld [vmem:[%s3648_s3 + $0x90] sm:$0xff] }
 0x1a0   : > { %v1004_v12 = vmul.f32 %v914_v6, %v844_v5  ;;  %2411 = vmatmul.msk.f32.gmra.mxu0 %vm1097_vm2, %v1073_v21  ;;  %1700 = vmatpush.msrb.mxu2 %v1585_v24  ;;  %v1091_v5 = vld [vmem:[%s2892_s29 + $0xd8] sm:$0xff]  ;;  %v1092_v21 = vld [vmem:[%s2892_s29 + $0xe0] sm:$0xff] }
 0x1a1   : > { %v761_v32 = vmul.f32 0.5, %v2980_v25  ;;  %v1033_v33 = vadd.f32 %v1001_v31, %v2821_v50 }
 0x1a2   : > { %v1036_v17 = vadd.f32 %v1004_v12, %v2842_v10  ;;  %1701 = vmatpush.msrb.mxu2 %v1584_v63 }
 0x1a3   : > { %v2584_v34 = vpop.eup %2583  ;;  %v811_v38 = vmul.f32 1.442695, %v761_v32  ;;  %2436 = vmatmul.msk.f32.gmra.mxu1 %vm1097_vm2, %v1033_v33  ;;  %v1089_v33 = vld [vmem:[%s2892_s29 + $0xc8] sm:$0xff] }
 0x1a4   : > { %937 = vrot.lane.b32.xlu2 %v2584_v34, %s2621_s25  ;;  %2427 = vmatmul.msk.f32.gmra.mxu2 %vm1097_vm2, %v1089_v33  ;;  %v849_v33 = vld [vmem:[%s2943_s8 + $0x50] sm:$0xff] }
 0x1a5   : > { %2585 = vpow2.f32 %v811_v38 }
 0x1a6   : > { %v704_v41 = vpop.f32.mrf.mxu1  ;;  %v910_v44 = vpop.permute.xlu1 %909 }
 0x1a7   : > { %v2992_v43 = vadd.f32 %v2804_v30, %v704_v41  ;;  %v1002_v47 = vmul.f32 %v910_v44, %v842_v40  ;;  %v1074_v41 = vld [vmem:[%s2892_s29 + $0x50] sm:$0xff]  ;;  %v846_v44 = vld [vmem:[%s2943_s8 + $0x38] sm:$0xff] }
 0x1a8   : > { %2412 = vmatmul.msk.f32.gmra.mxu0 %vm1097_vm2, %v1074_v41 }
 0x1a9   : > { %v762_v51 = vmul.f32 0.5, %v2992_v43  ;;  %v1034_v52 = vadd.f32 %v1002_v47, %v2828_v58 }
 0x1ab   : > { %v2586_v28 = vpop.eup %2585  ;;  %v813_v54 = vmul.f32 1.442695, %v762_v51  ;;  %2437 = vmatmul.msk.f32.gmra.mxu1 %vm1097_vm2, %v1034_v52  ;;  %v1090_v52 = vld [vmem:[%s2892_s29 + $0xd0] sm:$0xff] }
 0x1ac   : > { %939 = vrot.lane.b32.xlu0 %v2586_v28, %s2621_s25  ;;  %2428 = vmatmul.msk.f32.gmra.mxu2 %vm1097_vm2, %v1090_v52  ;;  %v850_v52 = vld [vmem:[%s2943_s8 + $0x58] sm:$0xff] }
 0x1ad   : > { %2587 = vpow2.f32 %v813_v54 }
 0x1ae   : > { %v707_v60 = vpop.f32.mrf.mxu1 }
 0x1af   : > { %v3007_v62 = vadd.f32 %v2804_v30, %v707_v60  ;;  %v1075_v60 = vld [vmem:[%s2892_s29 + $0x58] sm:$0xff] }
 0x1b0   : > { %2413 = vmatmul.msk.f32.gmra.mxu0 %vm1097_vm2, %v1075_v60  ;;  %v1094_v60 = vld [vmem:[%s2892_s29 + $0xf0] sm:$0xff] }
 0x1b1   : > { %v763_v1 = vmul.f32 0.5, %v3007_v62 }
 0x1b3   : > { %v2588_v4 = vpop.eup %2587  ;;  %v815_v7 = vmul.f32 1.442695, %v763_v1  ;;  %2438 = vmatmul.msk.f32.gmra.mxu1 %vm1097_vm2, %v1035_v3 }
 0x1b4   : > { %941 = vrot.lane.b32.xlu1 %v2588_v4, %s2621_s25  ;;  %2429 = vmatmul.msk.f32.gmra.mxu2 %vm1097_vm2, %v1091_v5 }
 0x1b5   : > { %2589 = vpow2.f32 %v815_v7 }
 0x1b6   : > { %v710_v13 = vpop.f32.mrf.mxu1  ;;  %v920_v57 = vpop.permute.xlu2 %919 }
 0x1b7   : > { %v3019_v14 = vadd.f32 %v2804_v30, %v710_v13  ;;  %v1007_v1 = vmul.f32 %v920_v57, %v847_v56  ;;  %v1076_v13 = vld [vmem:[%s2892_s29 + $0x60] sm:$0xff] }
 0x1b8   : > { %2414 = vmatmul.msk.f32.gmra.mxu0 %vm1097_vm2, %v1076_v13 }
 0x1b9   : > { %v764_v16 = vmul.f32 0.5, %v3019_v14  ;;  %v1039_v7 = vadd.f32 %v1007_v1, %v2863_v37 }
 0x1bb   : > { %v2590_v19 = vpop.eup %2589  ;;  %v817_v20 = vmul.f32 1.442695, %v764_v16  ;;  %2439 = vmatmul.msk.f32.gmra.mxu1 %vm1097_vm2, %v1036_v17 }
 0x1bc   : > { %943 = vrot.lane.b32.xlu2 %v2590_v19, %s2621_s25  ;;  %2430 = vmatmul.msk.f32.gmra.mxu2 %vm1097_vm2, %v1092_v21 }
 0x1bd   : > { %2591 = vpow2.f32 %v817_v20 }
 0x1be   : > { %v713_v27 = vpop.f32.mrf.mxu1  ;;  %v916_v29 = vpop.permute.xlu0 %915 }
 0x1bf   : > { %v3034_v31 = vadd.f32 %v2804_v30, %v713_v27  ;;  %v1005_v32 = vmul.f32 %v916_v29, %v845_v23 }
 0x1c1   : > { %v765_v34 = vmul.f32 0.5, %v3034_v31  ;;  %v1037_v38 = vadd.f32 %v1005_v32, %v2849_v18  ;;  %v1077_v32 = vld [vmem:[%s2892_s29 + $0x68] sm:$0xff] }
 0x1c2   : > { %2415 = vmatmul.msk.f32.gmra.mxu0 %vm1097_vm2, %v1077_v32 }
 0x1c3   : > { %v2592_v39 = vpop.eup %2591  ;;  %v819_v40 = vmul.f32 1.442695, %v765_v34  ;;  %2440 = vmatmul.msk.f32.gmra.mxu1 %vm1097_vm2, %v1037_v38  ;;  %v1583_v34 = vld [vmem:[%s3648_s3 + $0x80] sm:$0xff] }
 0x1c4   : > { %945 = vrot.lane.b32.xlu0 %v2592_v39, %s2621_s25  ;;  %1702 = vmatpush.msrb.mxu2 %v1583_v34 }
 0x1c5   : > { %2593 = vpow2.f32 %v819_v40 }
 0x1c6   : > { %v716_v45 = vpop.f32.mrf.mxu1  ;;  %v918_v47 = vpop.permute.xlu1 %917 }
 0x1c7   : > { %v3046_v48 = vadd.f32 %v2804_v30, %v716_v45  ;;  %v1006_v51 = vmul.f32 %v918_v47, %v846_v44  ;;  %v1093_v44 = vld [vmem:[%s2892_s29 + $0xe8] sm:$0xff] }
 0x1c8   : > { %2431 = vmatmul.msk.f32.gmra.mxu2 %vm1097_vm2, %v1093_v44 }
 0x1c9   : > { %v766_v28 = vmul.f32 0.5, %v3046_v48  ;;  %v1038_v53 = vadd.f32 %v1006_v51, %v2856_v26 }
 0x1cb   : > { %v2594_v54 = vpop.eup %2593  ;;  %v821_v59 = vmul.f32 1.442695, %v766_v28  ;;  %2441 = vmatmul.msk.f32.gmra.mxu1 %vm1097_vm2, %v1038_v53 }
 0x1cc   : > { %947 = vrot.lane.b32.xlu1 %v2594_v54, %s2621_s25  ;;  %v1078_v54 = vld [vmem:[%s2892_s29 + $0x70] sm:$0xff] }
 0x1cd   : > { %2595 = vpow2.f32 %v821_v59  ;;  %2416 = vmatmul.msk.f32.gmra.mxu0 %vm1097_vm2, %v1078_v54 }
 0x1ce   : > { %v719_v3 = vpop.f32.mrf.mxu1  ;;  %v926_v28 = vpop.permute.xlu2 %925 }
 0x1cf   : > { %v3061_v4 = vadd.f32 %v2804_v30, %v719_v3  ;;  %v1010_v56 = vmul.f32 %v926_v28, %v850_v52 }
 0x1d0   : > { %2432 = vmatmul.msk.f32.gmra.mxu2 %vm1097_vm2, %v1094_v60 }
 0x1d1   : > { %v767_v6 = vmul.f32 0.5, %v3061_v4  ;;  %v1042_v1 = vadd.f32 %v1010_v56, %v2884_v0  ;;  %v1840_v56 = vld [vmem:[%s3648_s3 + $0xf8] sm:$0xff] }
 0x1d2   : > { %1947 = vmatpush.msrb.mxu3 %v1840_v56 }
 0x1d3   : > { %v2596_v8 = vpop.eup %2595  ;;  %v823_v12 = vmul.f32 1.442695, %v767_v6  ;;  %2442 = vmatmul.msk.f32.gmra.mxu1 %vm1097_vm2, %v1039_v7  ;;  %v851_v6 = vld [vmem:[%s2943_s8 + $0x60] sm:$0xff]  ;;  %v1582_v7 = vld [vmem:[%s3648_s3 + $0x78] sm:$0xff] }
 0x1d4   : > { %949 = vrot.lane.b32.xlu2 %v2596_v8, %s2621_s25  ;;  %1703 = vmatpush.msrb.mxu2 %v1582_v7 }
 0x1d5   : > { %2597 = vpow2.f32 %v823_v12 }
 0x1d6   : > { %v722_v16 = vpop.f32.mrf.mxu1  ;;  %v922_v17 = vpop.permute.xlu0 %921 }
 0x1d7   : > { %v3073_v19 = vadd.f32 %v2804_v30, %v722_v16  ;;  %v1008_v20 = vmul.f32 %v922_v17, %v848_v15  ;;  %v1095_v16 = vld [vmem:[%s2892_s29 + $0xf8] sm:$0xff] }
 0x1d8   : > { %2433 = vmatmul.msk.f32.gmra.mxu2 %vm1097_vm2, %v1095_v16 }
 0x1d9   : > { %v768_v23 = vmul.f32 0.5, %v3073_v19  ;;  %v1040_v24 = vadd.f32 %v1008_v20, %v2870_v46 }
 0x1db   : > { %v2598_v27 = vpop.eup %2597  ;;  %v825_v29 = vmul.f32 1.442695, %v768_v23  ;;  %2443 = vmatmul.msk.f32.gmra.mxu1 %vm1097_vm2, %v1040_v24  ;;  %v1211_v24 = vpop.f32.mrf.mxu0 }
 0x1dc   : > { %951 = vrot.lane.b32.xlu0 %v2598_v27, %s2621_s25  ;;  %v3119_v27 = vpop.f32.mrf.mxu2 }
 0x1dd   : > { %2599 = vpow2.f32 %v825_v29  ;;  %v852_v29 = vld [vmem:[%s2943_s8 + $0x68] sm:$0xff] }
 0x1de   : > { %v725_v38 = vpop.f32.mrf.mxu1  ;;  %v924_v39 = vpop.permute.xlu1 %923 }
 0x1df   : > { %v3088_v40 = vadd.f32 %v2804_v30, %v725_v38  ;;  %v1009_v41 = vmul.f32 %v924_v39, %v849_v33 }
 0x1e1   : > { %v769_v45 = vmul.f32 0.5, %v3088_v40  ;;  %v1041_v47 = vadd.f32 %v1009_v41, %v2877_v55 }
 0x1e3   : > { %v2600_v51 = vpop.eup %2599  ;;  %v827_v53 = vmul.f32 1.442695, %v769_v45  ;;  %2444 = vmatmul.msk.f32.gmra.mxu1 %vm1097_vm2, %v1041_v47  ;;  %v853_v45 = vld [vmem:[%s2943_s8 + $0x70] sm:$0xff]  ;;  %v1214_v28 = vpop.f32.mrf.mxu0 }
 0x1e4   : > { %953 = vrot.lane.b32.xlu1 %v2600_v51, %s2621_s25  ;;  %v3130_v52 = vpop.f32.mrf.mxu2 }
 0x1e5   : > { %2601 = vpow2.f32 %v827_v53 }
 0x1e6   : > { %v728_v57 = vpop.f32.mrf.mxu1  ;;  %v932_v47 = vpop.permute.xlu2 %931 }
 0x1e7   : > { %v3100_v59 = vadd.f32 %v2804_v30, %v728_v57  ;;  %v1013_v53 = vmul.f32 %v932_v47, %v853_v45  ;;  %v856_v47 = vld [vmem:[%s2943_s8 + $0x88] sm:$0xff] }
 0x1e9   : > { %v770_v63 = vmul.f32 0.5, %v3100_v59 }
 0x1eb   : > { %v2602_v3 = vpop.eup %2601  ;;  %v829_v5 = vmul.f32 1.442695, %v770_v63  ;;  %2445 = vmatmul.msk.f32.gmra.mxu1 %vm1097_vm2, %v1042_v1  ;;  %v1045_v63 = vadd.f32 %v1013_v53, %v2922_v36  ;;  %v1217_v16 = vpop.f32.mrf.mxu0 }
 0x1ec   : > { %955 = vrot.lane.b32.xlu2 %v2602_v3, %s2621_s25 }
 0x1ed   : > { %2603 = vpow2.f32 %v829_v5  ;;  %v854_v5 = vld [vmem:[%s2943_s8 + $0x78] sm:$0xff] }
 0x1ee   : > { %v731_v8 = vpop.f32.mrf.mxu1  ;;  %v928_v12 = vpop.permute.xlu0 %927 }
 0x1ef   : > { %v3113_v13 = vadd.f32 %v2804_v30, %v731_v8  ;;  %v1011_v15 = vmul.f32 %v928_v12, %v851_v6  ;;  %v3145_v6 = vpop.f32.mrf.mxu2 }
 0x1f1   : > { %v771_v17 = vmul.f32 0.5, %v3113_v13  ;;  %v1043_v20 = vadd.f32 %v1011_v15, %v2898_v11 }
 0x1f3   : > { %v2604_v21 = vpop.eup %2603  ;;  %v831_v23 = vmul.f32 1.442695, %v771_v17  ;;  %2446 = vmatmul.msk.f32.gmra.mxu1 %vm1097_vm2, %v1043_v20  ;;  %v1220_v45 = vpop.f32.mrf.mxu0 }
 0x1f4   : > { %957 = vrot.lane.b32.xlu0 %v2604_v21, %s2621_s25 }
 0x1f5   : > { %2605 = vpow2.f32 %v831_v23 }
 0x1f6   : > { %v734_v32 = vpop.f32.mrf.mxu1  ;;  %v930_v33 = vpop.permute.xlu1 %929 }
 0x1f7   : > { %v3125_v34 = vadd.f32 %v2804_v30, %v734_v32  ;;  %v1012_v38 = vmul.f32 %v930_v33, %v852_v29  ;;  %v855_v29 = vld [vmem:[%s2943_s8 + $0x80] sm:$0xff]  ;;  %v3157_v32 = vpop.f32.mrf.mxu2  ;;  %v1839_v33 = vld [vmem:[%s3648_s3 + $0xf0] sm:$0xff] }
 0x1f8   : > { %1948 = vmatpush.msrb.mxu3 %v1839_v33 }
 0x1f9   : > { %v772_v39 = vmul.f32 0.5, %v3125_v34  ;;  %v1044_v41 = vadd.f32 %v1012_v38, %v2911_v22 }
 0x1fb   : > { %v2606_v44 = vpop.eup %2605  ;;  %v833_v51 = vmul.f32 1.442695, %v772_v39  ;;  %2447 = vmatmul.msk.f32.gmra.mxu1 %vm1097_vm2, %v1044_v41  ;;  %v3165_v39 = vld [vmem:[%s3648_s3 + $0x70] ss:$0 sm:$0xff] }
 0x1fc   : > { %959 = vrot.lane.b32.xlu1 %v2606_v44, %s2621_s25 }
 0x1fd   : > { %2607 = vpow2.f32 %v833_v51 }
 0x1fe   : > { %v737_v54 = vpop.f32.mrf.mxu1  ;;  %v938_v51 = vpop.permute.xlu2 %937 }
 0x1ff   : > { %v3138_v57 = vadd.f32 %v2804_v30, %v737_v54  ;;  %v1016_v56 = vmul.f32 %v938_v51, %v856_v47 }
 0x201   : > { %v773_v60 = vmul.f32 0.5, %v3138_v57 }
 0x203   : > { %v2608_v1 = vpop.eup %2607  ;;  %v835_v3 = vmul.f32 1.442695, %v773_v60  ;;  %2448 = vmatmul.msk.f32.gmra.mxu1 %vm1097_vm2, %v1045_v63  ;;  %v1048_v63 = vadd.f32 %v1016_v56, %v2965_v9 }
 0x204   : > { %961 = vrot.lane.b32.xlu2 %v2608_v1, %s2621_s25 }
 0x205   : > { %2609 = vpow2.f32 %v835_v3 }
 0x206   : > { %v740_v7 = vpop.f32.mrf.mxu1  ;;  %v934_v8 = vpop.permute.xlu0 %933 }
 0x207   : > { %v3148_v12 = vadd.f32 %v2804_v30, %v740_v7  ;;  %v1014_v15 = vmul.f32 %v934_v8, %v854_v5  ;;  %v1223_v5 = vpop.f32.mrf.mxu0 }
 0x209   : > { %v774_v17 = vmul.f32 0.5, %v3148_v12  ;;  %v1046_v20 = vadd.f32 %v1014_v15, %v2933_v49 }
 0x20b   : > { %v2610_v21 = vpop.eup %2609  ;;  %v837_v23 = vmul.f32 1.442695, %v774_v17  ;;  %2449 = vmatmul.msk.f32.vlgmr.msra.gmra.mxu3 %vm1097_vm2, %v1046_v20 }
 0x20c   : > { %2116 = vrot.lane.b32.xlu2 %v2808_v35, %s2622_s28  ;;  %963 = vrot.lane.b32.xlu0 %v2610_v21, %s2621_s25  ;;  %v858_v21 = vld [vmem:[%s2943_s8 + $0x98] sm:$0xff] }
 0x20d   : > { %2611 = vpow2.f32 %v837_v23 }
 0x20e   : > { %v936_v30 = vpop.permute.xlu1 %935 }
 0x20f   : > { %v1015_v38 = vmul.f32 %v936_v30, %v855_v29  ;;  %v1226_v23 = vpop.f32.mrf.mxu0 }
 0x210   : > { %v1420_v41 = vpop.f32.mrf.mxu1 }
 0x211   : > { %v1047_v35 = vadd.f32 %v1015_v38, %v2953_v61  ;;  %v1421_v44 = vadd.f32 %v1420_v41, %v1211_v24  ;;  %v3177_v24 = vpop.f32.mrf.mxu2  ;;  %v859_v41 = vld [vmem:[%s2943_s8 + $0xa0] sm:$0xff] }
 0x213   : > { %v2612_v53 = vpop.eup %2611  ;;  %v1518_v54 = vadd.f32 %v3165_v39, %v1421_v44  ;;  %2450 = vmatmul.msk.f32.gmra.mxu3 %vm1097_vm2, %v1047_v35 }
 0x214   : > { %965 = vrot.lane.b32.xlu1 %v2612_v53, %s2621_s25  ;;  %2122 = vrot.lane.b32.xlu2 %v2828_v58, %s2622_s28 }
 0x215   : > { %v1550_v60 = vmax.f32 %v1518_v54, 0.0  ;;  %2118 = vrot.lane.b32.xlu0 %v2814_v42, %s2622_s28  ;;  %v857_v42 = vld [vmem:[%s2943_s8 + $0x90] sm:$0xff] }
 0x216   : > { %v944_v35 = vpop.permute.xlu2 %943 }
 0x217   : > { %2466 = vmatmul.msk.f32.vlgmr.msrb.gmra.mxu2 %vm533_vm1, %v1550_v60  ;;  %v1229_v51 = vpop.f32.mrf.mxu0 }
 0x218   : > { %v1423_v1 = vpop.f32.mrf.mxu1 }
 0x219   : > { %v1424_v3 = vadd.f32 %v1423_v1, %v1214_v28 }
 0x21b   : > { %2451 = vmatmul.msk.f32.gmra.mxu3 %vm1097_vm2, %v1048_v63  ;;  %v1519_v7 = vadd.f32 %v3165_v39, %v1424_v3  ;;  %v1837_v63 = vld [vmem:[%s3648_s3 + $0xe0] sm:$0xff] }
 0x21c   : > { %2120 = vrot.lane.b32.xlu1 %v2821_v50, %s2622_s28  ;;  %2128 = vrot.lane.b32.xlu2 %v2849_v18, %s2622_s28  ;;  %v1838_v50 = vld [vmem:[%s3648_s3 + $0xe8] sm:$0xff]  ;;  %v3194_v18 = vpop.f32.mrf.mxu2 }
 0x21d   : > { %2124 = vrot.lane.b32.xlu0 %v2835_v2, %s2622_s28  ;;  %v1551_v58 = vmax.f32 %v1519_v7, 0.0  ;;  %1949 = vmatpush.msrb.mxu3 %v1838_v50  ;;  %v861_v7 = vld [vmem:[%s2943_s8 + $0xb0] sm:$0xff]  ;;  %v862_v50 = vld [vmem:[%s2943_s8 + $0xb8] sm:$0xff] }
 0x21e   : > { %v940_v8 = vpop.permute.xlu0 %939 }
 0x21f   : > { %v1017_v15 = vmul.f32 %v940_v8, %v857_v42  ;;  %2467 = vmatmul.msk.f32.gmra.mxu2 %vm533_vm1, %v1551_v58  ;;  %1950 = vmatpush.msrb.mxu3 %v1837_v63  ;;  %v1232_v3 = vpop.f32.mrf.mxu0 }
 0x220   : > { %v1426_v17 = vpop.f32.mrf.mxu1 }
 0x221   : > { %v1049_v28 = vadd.f32 %v1017_v15, %v2980_v25  ;;  %v1427_v20 = vadd.f32 %v1426_v17, %v1217_v16 }
 0x223   : > { %2452 = vmatmul.msk.f32.gmra.mxu3 %vm1097_vm2, %v1049_v28  ;;  %v1520_v2 = vadd.f32 %v3165_v39, %v1427_v20 }
 0x224   : > { %2126 = vrot.lane.b32.xlu1 %v2842_v10, %s2622_s28  ;;  %2134 = vrot.lane.b32.xlu2 %v2870_v46, %s2622_s28  ;;  %v1019_v46 = vmul.f32 %v944_v35, %v859_v41 }
 0x225   : > { %2130 = vrot.lane.b32.xlu0 %v2856_v26, %s2622_s28  ;;  %v1552_v16 = vmax.f32 %v1520_v2, 0.0  ;;  %v3214_v26 = vpop.f32.mrf.mxu2 }
 0x226   : > { %v942_v29 = vpop.permute.xlu1 %941 }
 0x227   : > { %v1018_v30 = vmul.f32 %v942_v29, %v858_v21  ;;  %2468 = vmatmul.msk.f32.gmra.mxu2 %vm533_vm1, %v1552_v16 }
 0x228   : > { %v1429_v38 = vpop.f32.mrf.mxu1 }
 0x229   : > { %v1050_v33 = vadd.f32 %v1018_v30, %v2992_v43  ;;  %v1430_v44 = vadd.f32 %v1429_v38, %v1220_v45  ;;  %v1051_v45 = vadd.f32 %v1019_v46, %v3007_v62 }
 0x22b   : > { %2453 = vmatmul.msk.f32.gmra.mxu3 %vm1097_vm2, %v1050_v33  ;;  %v1521_v10 = vadd.f32 %v3165_v39, %v1430_v44 }
 0x22c   : > { %2132 = vrot.lane.b32.xlu1 %v2863_v37, %s2622_s28  ;;  %2140 = vrot.lane.b32.xlu2 %v2898_v11, %s2622_s28  ;;  %v860_v11 = vld [vmem:[%s2943_s8 + $0xa8] sm:$0xff] }
 0x22d   : > { %2136 = vrot.lane.b32.xlu0 %v2877_v55, %s2622_s28  ;;  %v1553_v47 = vmax.f32 %v1521_v10, 0.0  ;;  %v3229_v60 = vpop.f32.mrf.mxu2 }
 0x22e   : > { %v950_v20 = vpop.permute.xlu2 %949 }
 0x22f   : > { %2469 = vmatmul.msk.f32.gmra.mxu2 %vm533_vm1, %v1553_v47 }
 0x230   : > { %v1432_v53 = vpop.f32.mrf.mxu1 }
 0x231   : > { %v1433_v54 = vadd.f32 %v1432_v53, %v1223_v5 }
 0x233   : > { %2454 = vmatmul.msk.f32.gmra.mxu3 %vm1097_vm2, %v1051_v45  ;;  %v1522_v37 = vadd.f32 %v3165_v39, %v1433_v54  ;;  %v1835_v45 = vld [vmem:[%s3648_s3 + $0xd0] sm:$0xff] }
 0x234   : > { %2138 = vrot.lane.b32.xlu1 %v2884_v0, %s2622_s28  ;;  %2146 = vrot.lane.b32.xlu2 %v2933_v49, %s2622_s28 }
 0x235   : > { %2142 = vrot.lane.b32.xlu0 %v2911_v22, %s2622_s28  ;;  %v1554_v55 = vmax.f32 %v1522_v37, 0.0  ;;  %v3246_v15 = vpop.f32.mrf.mxu2 }
 0x236   : > { %v946_v56 = vpop.permute.xlu0 %945 }
 0x237   : > { %v1020_v1 = vmul.f32 %v946_v56, %v860_v11  ;;  %2470 = vmatmul.msk.f32.gmra.mxu2 %vm533_vm1, %v1554_v55  ;;  %v865_v11 = vld [vmem:[%s2943_s8 + $0xd0] sm:$0xff] }
 0x238   : > { %v1435_v49 = vpop.f32.mrf.mxu1 }
 0x239   : > { %v1052_v0 = vadd.f32 %v1020_v1, %v3019_v14  ;;  %v1436_v5 = vadd.f32 %v1435_v49, %v1226_v23  ;;  %v1836_v23 = vld [vmem:[%s3648_s3 + $0xd8] sm:$0xff] }
 0x23a   : > { %1951 = vmatpush.msrb.mxu3 %v1836_v23 }
 0x23b   : > { %2455 = vmatmul.msk.f32.gmra.mxu3 %vm1097_vm2, %v1052_v0  ;;  %v1523_v22 = vadd.f32 %v3165_v39, %v1436_v5 }
 0x23c   : > { %2144 = vrot.lane.b32.xlu1 %v2922_v36, %s2622_s28  ;;  %2152 = vrot.lane.b32.xlu2 %v2980_v25, %s2622_s28  ;;  %v1235_v25 = vpop.f32.mrf.mxu0 }
 0x23d   : > { %2148 = vrot.lane.b32.xlu0 %v2953_v61, %s2622_s28  ;;  %v1555_v42 = vmax.f32 %v1523_v22, 0.0  ;;  %v1022_v61 = vmul.f32 %v950_v20, %v862_v50  ;;  %v3263_v30 = vpop.f32.mrf.mxu2  ;;  %1952 = vmatpush.msrb.mxu3 %v1835_v45 }
 0x23e   : > { %v948_v58 = vpop.permute.xlu1 %947 }
 0x23f   : > { %v1021_v8 = vmul.f32 %v948_v58, %v861_v7  ;;  %2471 = vmatmul.msk.f32.gmra.mxu2 %vm533_vm1, %v1555_v42  ;;  %v1054_v16 = vadd.f32 %v1022_v61, %v3046_v48  ;;  %v866_v42 = vld [vmem:[%s2943_s8 + $0xd8] sm:$0xff]  ;;  %v867_v61 = vld [vmem:[%s2943_s8 + $0xe0] sm:$0xff] }
 0x240   : > { %v1438_v17 = vpop.f32.mrf.mxu1 }
 0x241   : > { %v1053_v28 = vadd.f32 %v1021_v8, %v3034_v31  ;;  %v1439_v36 = vadd.f32 %v1438_v17, %v1229_v51 }
 0x243   : > { %2456 = vmatmul.msk.f32.gmra.mxu3 %vm1097_vm2, %v1053_v28  ;;  %v1524_v2 = vadd.f32 %v3165_v39, %v1439_v36 }
 0x244   : > { %2150 = vrot.lane.b32.xlu1 %v2965_v9, %s2622_s28  ;;  %2158 = vrot.lane.b32.xlu2 %v3019_v14, %s2622_s28  ;;  %v1238_v33 = vpop.f32.mrf.mxu0 }
 0x245   : > { %2154 = vrot.lane.b32.xlu0 %v2992_v43, %s2622_s28  ;;  %v1556_v21 = vmax.f32 %v1524_v2, 0.0  ;;  %v863_v43 = vld [vmem:[%s2943_s8 + $0xc0] sm:$0xff]  ;;  %v3283_v47 = vpop.f32.mrf.mxu2 }
 0x246   : > { %v956_v55 = vpop.permute.xlu2 %955 }
 0x247   : > { %2472 = vmatmul.msk.f32.gmra.mxu2 %vm533_vm1, %v1556_v21  ;;  %v1025_v1 = vmul.f32 %v956_v55, %v865_v11 }
 0x248   : > { %v1441_v29 = vpop.f32.mrf.mxu1 }
 0x249   : > { %v1442_v9 = vadd.f32 %v1441_v29, %v1232_v3  ;;  %v1057_v49 = vadd.f32 %v1025_v1, %v3088_v40 }
 0x24b   : > { %2457 = vmatmul.msk.f32.gmra.mxu3 %vm1097_vm2, %v1054_v16  ;;  %v1525_v14 = vadd.f32 %v3165_v39, %v1442_v9 }
 0x24c   : > { %2156 = vrot.lane.b32.xlu1 %v3007_v62, %s2622_s28  ;;  %2164 = vrot.lane.b32.xlu2 %v3061_v4, %s2622_s28  ;;  %v1241_v54 = vpop.f32.mrf.mxu0 }
 0x24d   : > { %2160 = vrot.lane.b32.xlu0 %v3034_v31, %s2622_s28  ;;  %v1557_v38 = vmax.f32 %v1525_v14, 0.0  ;;  %v864_v31 = vld [vmem:[%s2943_s8 + $0xc8] sm:$0xff]  ;;  %v3301_v0 = vpop.f32.mrf.mxu2 }
 0x24e   : > { %v952_v41 = vpop.permute.xlu0 %951  ;;  %v868_v14 = vld [vmem:[%s2943_s8 + $0xe8] sm:$0xff] }
 0x24f   : > { %v1023_v35 = vmul.f32 %v952_v41, %v863_v43  ;;  %2473 = vmatmul.msk.f32.gmra.mxu2 %vm533_vm1, %v1557_v38  ;;  %v1833_v41 = vld [vmem:[%s3648_s3 + $0xc0] sm:$0xff] }
 0x250   : > { %v1444_v10 = vpop.f32.mrf.mxu1 }
 0x251   : > { %v1055_v44 = vadd.f32 %v1023_v35, %v3061_v4  ;;  %v1445_v46 = vadd.f32 %v1444_v10, %v1235_v25 }
 0x253   : > { %2458 = vmatmul.msk.f32.gmra.mxu3 %vm1097_vm2, %v1055_v44  ;;  %v1526_v62 = vadd.f32 %v3165_v39, %v1445_v46 }
 0x254   : > { %2162 = vrot.lane.b32.xlu1 %v3046_v48, %s2622_s28  ;;  %2170 = vrot.lane.b32.xlu2 %v3100_v59, %s2622_s28  ;;  %v1244_v5 = vpop.f32.mrf.mxu0 }
 0x255   : > { %2166 = vrot.lane.b32.xlu0 %v3073_v19, %s2622_s28  ;;  %v1558_v4 = vmax.f32 %v1526_v62, 0.0  ;;  %v3316_v17 = vpop.f32.mrf.mxu2 }
 0x256   : > { %v954_v51 = vpop.permute.xlu1 %953 }
 0x257   : > { %v1024_v53 = vmul.f32 %v954_v51, %v864_v31  ;;  %2474 = vmatmul.msk.f32.gmra.mxu2 %vm533_vm1, %v1558_v4  ;;  %v869_v4 = vld [vmem:[%s2943_s8 + $0xf0] sm:$0xff] }
 0x258   : > { %v1447_v37 = vpop.f32.mrf.mxu1 }
 0x259   : > { %v1056_v48 = vadd.f32 %v1024_v53, %v3073_v19  ;;  %v1448_v56 = vadd.f32 %v1447_v37, %v1238_v33 }
 0x25b   : > { %2459 = vmatmul.msk.f32.gmra.mxu3 %vm1097_vm2, %v1056_v48  ;;  %v1527_v63 = vadd.f32 %v3165_v39, %v1448_v56  ;;  %v870_v56 = vld [vmem:[%s2943_s8 + $0xf8] sm:$0xff] }
 0x25c   : > { %2168 = vrot.lane.b32.xlu1 %v3088_v40, %s2622_s28  ;;  %2176 = vrot.lane.b32.xlu2 %v3138_v57, %s2622_s28  ;;  %v1834_v40 = vld [vmem:[%s3648_s3 + $0xc8] sm:$0xff]  ;;  %v1247_v25 = vpop.f32.mrf.mxu0 }
 0x25d   : > { %2172 = vrot.lane.b32.xlu0 %v3113_v13, %s2622_s28  ;;  %v1559_v19 = vmax.f32 %v1527_v63, 0.0  ;;  %1953 = vmatpush.msrb.mxu3 %v1834_v40  ;;  %v3325_v33 = vpop.f32.mrf.mxu2 }
 0x25e   : > { %v962_v43 = vpop.permute.xlu2 %961 }
 0x25f   : > { %2475 = vmatmul.msk.f32.gmra.mxu2 %vm533_vm1, %v1559_v19  ;;  %v1028_v35 = vmul.f32 %v962_v43, %v868_v14  ;;  %1954 = vmatpush.msrb.mxu3 %v1833_v41 }
 0x260   : > { %v1450_v3 = vpop.f32.mrf.mxu1 }
 0x261   : > { %v1451_v22 = vadd.f32 %v1450_v3, %v1241_v54 }
 0x263   : > { %2460 = vmatmul.msk.f32.gmra.mxu3 %vm1097_vm2, %v1057_v49  ;;  %v1528_v7 = vadd.f32 %v3165_v39, %v1451_v22 }
 0x264   : > { %2174 = vrot.lane.b32.xlu1 %v3125_v34, %s2622_s28  ;;  %v1250_v44 = vpop.f32.mrf.mxu0 }
 0x265   : > { %2178 = vrot.lane.b32.xlu0 %v3148_v12, %s2622_s28  ;;  %v1560_v58 = vmax.f32 %v1528_v7, 0.0  ;;  %v3337_v51 = vpop.f32.mrf.mxu2 }
 0x266   : > { %v958_v8 = vpop.permute.xlu0 %957 }
 0x267   : > { %v1026_v28 = vmul.f32 %v958_v8, %v866_v42  ;;  %2476 = vmatmul.msk.f32.gmra.mxu2 %vm533_vm1, %v1560_v58  ;;  %v3357_v8 = vld [vmem:[%s3648_s3 + $0xb8] ss:$0 sm:$0xff] }
 0x268   : > { %v1453_v20 = vpop.f32.mrf.mxu1 }
 0x269   : > { %v1058_v50 = vadd.f32 %v1026_v28, %v3100_v59  ;;  %v1454_v36 = vadd.f32 %v1453_v20, %v1244_v5 }
 0x26b   : > { %2461 = vmatmul.msk.f32.gmra.mxu3 %vm1097_vm2, %v1058_v50  ;;  %v1529_v2 = vadd.f32 %v3165_v39, %v1454_v36 }
 0x26c   : > { %v1253_v48 = vpop.f32.mrf.mxu0 }
 0x26d   : > { %v1561_v21 = vmax.f32 %v1529_v2, 0.0  ;;  %v3344_v19 = vpop.f32.mrf.mxu2 }
 0x26e   : > { %v960_v23 = vpop.permute.xlu1 %959 }
 0x26f   : > { %v1027_v16 = vmul.f32 %v960_v23, %v867_v61  ;;  %2477 = vmatmul.msk.f32.gmra.mxu2 %vm533_vm1, %v1561_v21 }
 0x270   : > { %v1456_v9 = vpop.f32.mrf.mxu1 }
 0x271   : > { %v1059_v29 = vadd.f32 %v1027_v16, %v3113_v13  ;;  %v1457_v59 = vadd.f32 %v1456_v9, %v1247_v25  ;;  %v1060_v13 = vadd.f32 %v1028_v35, %v3125_v34 }
 0x273   : > { %2462 = vmatmul.msk.f32.gmra.mxu3 %vm1097_vm2, %v1059_v29  ;;  %v1530_v38 = vadd.f32 %v3165_v39, %v1457_v59 }
 0x275   : > { %v1562_v10 = vmax.f32 %v1530_v38, 0.0  ;;  %v3350_v22 = vpop.f32.mrf.mxu2 }
 0x277   : > { %2478 = vmatmul.msk.f32.gmra.mxu2 %vm533_vm1, %v1562_v10 }
 0x278   : > { %v1459_v46 = vpop.f32.mrf.mxu1 }
 0x279   : > { %v1460_v62 = vadd.f32 %v1459_v46, %v1250_v44 }
 0x27b   : > { %2463 = vmatmul.msk.f32.gmra.mxu3 %vm1097_vm2, %v1060_v13  ;;  %v1531_v31 = vadd.f32 %v3165_v39, %v1460_v62 }
 0x27d   : > { %v1563_v45 = vmax.f32 %v1531_v31, 0.0 }
 0x27e   : > { %v964_v53 = vpop.permute.xlu0 %963 }
 0x27f   : > { %v1029_v54 = vmul.f32 %v964_v53, %v869_v4  ;;  %2479 = vmatmul.msk.f32.gmra.mxu2 %vm533_vm1, %v1563_v45 }
 0x280   : > { %v1462_v11 = vpop.f32.mrf.mxu1 }
 0x281   : > { %v1061_v37 = vadd.f32 %v1029_v54, %v3138_v57  ;;  %v1463_v34 = vadd.f32 %v1462_v11, %v1253_v48 }
 0x283   : > { %2464 = vmatmul.msk.f32.gmra.mxu3 %vm1097_vm2, %v1061_v37  ;;  %v1532_v55 = vadd.f32 %v3165_v39, %v1463_v34 }
 0x285   : > { %v1564_v63 = vmax.f32 %v1532_v55, 0.0 }
 0x286   : > { %v966_v1 = vpop.permute.xlu1 %965 }
 0x287   : > { %v1030_v49 = vmul.f32 %v966_v1, %v870_v56  ;;  %2480 = vmatmul.msk.f32.gmra.mxu2 %vm533_vm1, %v1564_v63 }
 0x289   : > { %v1062_v3 = vadd.f32 %v1030_v49, %v3148_v12 }
 0x28b   : > { %2465 = vmatmul.msk.f32.gmra.mxu3 %vm1097_vm2, %v1062_v3 }
 0x28e   : > { %v1465_v5 = vpop.f32.mrf.mxu3 }
 0x28f   : > { %v1466_v57 = vadd.f32 %v1465_v5, %v3119_v27 }
 0x291   : > { %v1533_v7 = vadd.f32 %v3165_v39, %v1466_v57 }
 0x293   : > { %v1565_v42 = vmax.f32 %v1533_v7, 0.0 }
 0x295   : > { %2481 = vmatmul.msk.f32.gmra.mxu2 %vm533_vm1, %v1565_v42 }
 0x296   : > { %v1468_v58 = vpop.f32.mrf.mxu3 }
 0x297   : > { %v1469_v12 = vadd.f32 %v1468_v58, %v3130_v52 }
 0x299   : > { %v1534_v40 = vadd.f32 %v3165_v39, %v1469_v12 }
 0x29a   : > { %v1705_v28 = vpop.f32.mrf.mxu2 }
 0x29b   : > { %v1706_v27 = vadd.f32 %v3357_v8, %v1705_v28  ;;  %v1566_v50 = vmax.f32 %v1534_v40, 0.0 }
 0x29d   : > { %v1801_v20 = vmax.f32 %v1706_v27, 0.0  ;;  %2482 = vmatmul.msk.f32.gmra.mxu2 %vm533_vm1, %v1566_v50 }
 0x29e   : > { %v1471_v36 = vpop.f32.mrf.mxu3 }
 0x29f   : > { %2498 = vmatmul.msk.f32.vlgmr.msrb.gmra.mxu3 %vm533_vm1, %v1801_v20  ;;  %v1472_v25 = vadd.f32 %v1471_v36, %v3145_v6 }
 0x2a1   : > { %v1535_v2 = vadd.f32 %v3165_v39, %v1472_v25 }
 0x2a2   : > { %v1708_v61 = vpop.f32.mrf.mxu2 }
 0x2a3   : > { %v1567_v21 = vmax.f32 %v1535_v2, 0.0  ;;  %v1709_v52 = vadd.f32 %v3357_v8, %v1708_v61 }
 0x2a5   : > { %v1802_v23 = vmax.f32 %v1709_v52, 0.0  ;;  %2483 = vmatmul.msk.f32.gmra.mxu2 %vm533_vm1, %v1567_v21 }
 0x2a6   : > { %v1474_v16 = vpop.f32.mrf.mxu3 }
 0x2a7   : > { %v1475_v29 = vadd.f32 %v1474_v16, %v3157_v32  ;;  %2499 = vmatmul.msk.f32.gmra.mxu3 %vm533_vm1, %v1802_v23 }
 0x2a9   : > { %v1536_v9 = vadd.f32 %v3165_v39, %v1475_v29 }
 0x2aa   : > { %v1711_v14 = vpop.f32.mrf.mxu2 }
 0x2ab   : > { %v1568_v43 = vmax.f32 %v1536_v9, 0.0  ;;  %v1712_v6 = vadd.f32 %v3357_v8, %v1711_v14 }
 0x2ad   : > { %v1803_v59 = vmax.f32 %v1712_v6, 0.0  ;;  %2484 = vmatmul.msk.f32.gmra.mxu2 %vm533_vm1, %v1568_v43 }
 0x2ae   : > { %v1477_v38 = vpop.f32.mrf.mxu3 }
 0x2af   : > { %v1478_v41 = vadd.f32 %v1477_v38, %v3177_v24  ;;  %2500 = vmatmul.msk.f32.gmra.mxu3 %vm533_vm1, %v1803_v59 }
 0x2b1   : > { %v1537_v35 = vadd.f32 %v3165_v39, %v1478_v41 }
 0x2b2   : > { %v1714_v44 = vpop.f32.mrf.mxu2 }
 0x2b3   : > { %v1569_v32 = vmax.f32 %v1537_v35, 0.0  ;;  %v1715_v10 = vadd.f32 %v3357_v8, %v1714_v44 }
 0x2b5   : > { %v1804_v13 = vmax.f32 %v1715_v10, 0.0  ;;  %2485 = vmatmul.msk.f32.gmra.mxu2 %vm533_vm1, %v1569_v32 }
 0x2b6   : > { %v1480_v46 = vpop.f32.mrf.mxu3 }
 0x2b7   : > { %v1481_v62 = vadd.f32 %v1480_v46, %v3194_v18  ;;  %2501 = vmatmul.msk.f32.gmra.mxu3 %vm533_vm1, %v1804_v13 }
 0x2b9   : > { %v1538_v31 = vadd.f32 %v3165_v39, %v1481_v62 }
 0x2ba   : > { %v1717_v4 = vpop.f32.mrf.mxu2 }
 0x2bb   : > { %v1570_v24 = vmax.f32 %v1538_v31, 0.0  ;;  %v1718_v45 = vadd.f32 %v3357_v8, %v1717_v4 }
 0x2bd   : > { %v1805_v53 = vmax.f32 %v1718_v45, 0.0  ;;  %2486 = vmatmul.msk.f32.gmra.mxu2 %vm533_vm1, %v1570_v24 }
 0x2be   : > { %v1483_v54 = vpop.f32.mrf.mxu3 }
 0x2bf   : > { %v1484_v48 = vadd.f32 %v1483_v54, %v3214_v26  ;;  %2502 = vmatmul.msk.f32.gmra.mxu3 %vm533_vm1, %v1805_v53 }
 0x2c1   : > { %v1539_v37 = vadd.f32 %v3165_v39, %v1484_v48 }
 0x2c2   : > { %v1720_v11 = vpop.f32.mrf.mxu2 }
 0x2c3   : > { %v1571_v18 = vmax.f32 %v1539_v37, 0.0  ;;  %v1721_v34 = vadd.f32 %v3357_v8, %v1720_v11 }
 0x2c5   : > { %v1806_v55 = vmax.f32 %v1721_v34, 0.0  ;;  %2487 = vmatmul.msk.f32.gmra.mxu2 %vm533_vm1, %v1571_v18 }
 0x2c6   : > { %v1486_v56 = vpop.f32.mrf.mxu3 }
 0x2c7   : > { %v1487_v63 = vadd.f32 %v1486_v56, %v3229_v60  ;;  %2503 = vmatmul.msk.f32.gmra.mxu3 %vm533_vm1, %v1806_v55 }
 0x2c9   : > { %v1540_v1 = vadd.f32 %v3165_v39, %v1487_v63 }
 0x2ca   : > { %v1723_v49 = vpop.f32.mrf.mxu2 }
 0x2cb   : > { %v1572_v26 = vmax.f32 %v1540_v1, 0.0  ;;  %v1724_v3 = vadd.f32 %v3357_v8, %v1723_v49 }
 0x2cd   : > { %v1807_v5 = vmax.f32 %v1724_v3, 0.0  ;;  %2488 = vmatmul.msk.f32.gmra.mxu2 %vm533_vm1, %v1572_v26 }
 0x2ce   : > { %v1489_v57 = vpop.f32.mrf.mxu3 }
 0x2cf   : > { %v1490_v7 = vadd.f32 %v1489_v57, %v3246_v15  ;;  %2504 = vmatmul.msk.f32.gmra.mxu3 %vm533_vm1, %v1807_v5 }
 0x2d1   : > { %v1541_v42 = vadd.f32 %v3165_v39, %v1490_v7 }
 0x2d2   : > { %v1726_v58 = vpop.f32.mrf.mxu2 }
 0x2d3   : > { %v1573_v60 = vmax.f32 %v1541_v42, 0.0  ;;  %v1727_v12 = vadd.f32 %v3357_v8, %v1726_v58  ;;  %v3442_v42 = vld [vmem:[%s3648_s3 + $0x100] ss:$0 sm:$0xff] }
 0x2d5   : > { %v1808_v40 = vmax.f32 %v1727_v12, 0.0  ;;  %2489 = vmatmul.msk.f32.gmra.mxu2 %vm533_vm1, %v1573_v60 }
 0x2d6   : > { %v1492_v28 = vpop.f32.mrf.mxu3 }
 0x2d7   : > { %v1493_v27 = vadd.f32 %v1492_v28, %v3263_v30  ;;  %2505 = vmatmul.msk.f32.gmra.mxu3 %vm533_vm1, %v1808_v40  ;;  %v2117_v40 = vpop.permute.xlu2 %2116 }
 0x2d9   : > { %v1542_v50 = vadd.f32 %v3165_v39, %v1493_v27 }
 0x2da   : > { %v1729_v20 = vpop.f32.mrf.mxu2 }
 0x2db   : > { %v1574_v15 = vmax.f32 %v1542_v50, 0.0  ;;  %v1730_v36 = vadd.f32 %v3357_v8, %v1729_v20 }
 0x2dd   : > { %v1809_v25 = vmax.f32 %v1730_v36, 0.0  ;;  %2490 = vmatmul.msk.f32.gmra.mxu2 %vm533_vm1, %v1574_v15  ;;  %v2119_v36 = vpop.permute.xlu0 %2118 }
 0x2de   : > { %v1495_v2 = vpop.f32.mrf.mxu3 }
 0x2df   : > { %v1496_v61 = vadd.f32 %v1495_v2, %v3283_v47  ;;  %2506 = vmatmul.msk.f32.gmra.mxu3 %vm533_vm1, %v1809_v25 }
 0x2e1   : > { %v1543_v21 = vadd.f32 %v3165_v39, %v1496_v61 }
 0x2e2   : > { %v1732_v52 = vpop.f32.mrf.mxu2 }
 0x2e3   : > { %v1575_v30 = vmax.f32 %v1543_v21, 0.0  ;;  %v1733_v23 = vadd.f32 %v3357_v8, %v1732_v52 }
 0x2e5   : > { %v1810_v16 = vmax.f32 %v1733_v23, 0.0  ;;  %2491 = vmatmul.msk.f32.gmra.mxu2 %vm533_vm1, %v1575_v30  ;;  %v2121_v30 = vpop.permute.xlu1 %2120 }
 0x2e6   : > { %v1498_v29 = vpop.f32.mrf.mxu3 }
 0x2e7   : > { %v1499_v9 = vadd.f32 %v1498_v29, %v3301_v0  ;;  %2507 = vmatmul.msk.f32.gmra.mxu3 %vm533_vm1, %v1810_v16 }
 0x2e9   : > { %v1544_v14 = vadd.f32 %v3165_v39, %v1499_v9 }
 0x2ea   : > { %v1735_v43 = vpop.f32.mrf.mxu2 }
 0x2eb   : > { %v1576_v47 = vmax.f32 %v1544_v14, 0.0  ;;  %v1736_v6 = vadd.f32 %v3357_v8, %v1735_v43  ;;  %v2123_v43 = vpop.permute.xlu2 %2122 }
 0x2ed   : > { %v1811_v59 = vmax.f32 %v1736_v6, 0.0  ;;  %2492 = vmatmul.msk.f32.gmra.mxu2 %vm533_vm1, %v1576_v47 }
 0x2ee   : > { %v1501_v38 = vpop.f32.mrf.mxu3 }
 0x2ef   : > { %v1502_v41 = vadd.f32 %v1501_v38, %v3316_v17  ;;  %2508 = vmatmul.msk.f32.gmra.mxu3 %vm533_vm1, %v1811_v59 }
 0x2f1   : > { %v1545_v35 = vadd.f32 %v3165_v39, %v1502_v41 }
 0x2f2   : > { %v1738_v44 = vpop.f32.mrf.mxu2 }
 0x2f3   : > { %v1577_v0 = vmax.f32 %v1545_v35, 0.0  ;;  %v1739_v32 = vadd.f32 %v3357_v8, %v1738_v44  ;;  %v2125_v35 = vpop.permute.xlu0 %2124 }
 0x2f5   : > { %v1812_v10 = vmax.f32 %v1739_v32, 0.0  ;;  %2493 = vmatmul.msk.f32.gmra.mxu2 %vm533_vm1, %v1577_v0 }
 0x2f6   : > { %v1504_v13 = vpop.f32.mrf.mxu3 }
 0x2f7   : > { %v1505_v46 = vadd.f32 %v1504_v13, %v3325_v33  ;;  %2509 = vmatmul.msk.f32.gmra.mxu3 %vm533_vm1, %v1812_v10 }
 0x2f9   : > { %v1546_v62 = vadd.f32 %v3165_v39, %v1505_v46  ;;  %v2127_v46 = vpop.permute.xlu1 %2126 }
 0x2fa   : > { %v1741_v31 = vpop.f32.mrf.mxu2 }
 0x2fb   : > { %v1578_v17 = vmax.f32 %v1546_v62, 0.0  ;;  %v1742_v4 = vadd.f32 %v3357_v8, %v1741_v31 }
 0x2fd   : > { %v1813_v24 = vmax.f32 %v1742_v4, 0.0  ;;  %2494 = vmatmul.msk.f32.gmra.mxu2 %vm533_vm1, %v1578_v17 }
 0x2fe   : > { %v1507_v45 = vpop.f32.mrf.mxu3 }
 0x2ff   : > { %v1508_v53 = vadd.f32 %v1507_v45, %v3337_v51  ;;  %2510 = vmatmul.msk.f32.gmra.mxu3 %vm533_vm1, %v1813_v24  ;;  %v2129_v45 = vpop.permute.xlu2 %2128 }
 0x301   : > { %v1547_v54 = vadd.f32 %v3165_v39, %v1508_v53 }
 0x302   : > { %v1744_v48 = vpop.f32.mrf.mxu2 }
 0x303   : > { %v1579_v33 = vmax.f32 %v1547_v54, 0.0  ;;  %v1745_v37 = vadd.f32 %v3357_v8, %v1744_v48 }
 0x305   : > { %v1814_v11 = vmax.f32 %v1745_v37, 0.0  ;;  %2495 = vmatmul.msk.f32.gmra.mxu2 %vm533_vm1, %v1579_v33 }
 0x306   : > { %v1510_v18 = vpop.f32.mrf.mxu3 }
 0x307   : > { %v1511_v34 = vadd.f32 %v1510_v18, %v3344_v19  ;;  %2511 = vmatmul.msk.f32.gmra.mxu3 %vm533_vm1, %v1814_v11  ;;  %v2131_v11 = vpop.permute.xlu0 %2130 }
 0x309   : > { %v1548_v55 = vadd.f32 %v3165_v39, %v1511_v34 }
 0x30a   : > { %v1747_v56 = vpop.f32.mrf.mxu2 }
 0x30b   : > { %v1580_v51 = vmax.f32 %v1548_v55, 0.0  ;;  %v1748_v63 = vadd.f32 %v3357_v8, %v1747_v56 }
 0x30d   : > { %v1815_v1 = vmax.f32 %v1748_v63, 0.0  ;;  %2496 = vmatmul.msk.f32.gmra.mxu2 %vm533_vm1, %v1580_v51  ;;  %v2133_v63 = vpop.permute.xlu1 %2132 }
 0x30e   : > { %v1513_v49 = vpop.f32.mrf.mxu3 }
 0x30f   : > { %v1514_v26 = vadd.f32 %v1513_v49, %v3350_v22  ;;  %2512 = vmatmul.msk.f32.gmra.mxu3 %vm533_vm1, %v1815_v1 }
 0x311   : > { %v1549_v3 = vadd.f32 %v3165_v39, %v1514_v26 }
 0x313   : > { %v1581_v19 = vmax.f32 %v1549_v3, 0.0 }
 0x315   : > { %2497 = vmatmul.msk.f32.gmra.mxu2 %vm533_vm1, %v1581_v19 }
 0x318   : > { %v1750_v5 = vpop.f32.mrf.mxu2 }
 0x319   : > { %v1751_v57 = vadd.f32 %v3357_v8, %v1750_v5  ;;  %v2135_v5 = vpop.permute.xlu2 %2134 }
 0x31b   : > { %v1816_v7 = vmax.f32 %v1751_v57, 0.0 }
 0x31d   : > { %2513 = vmatmul.msk.f32.gmra.mxu3 %vm533_vm1, %v1816_v7 }
 0x320   : > { %v1753_v58 = vpop.f32.mrf.mxu2 }
 0x321   : > { %v1754_v22 = vadd.f32 %v3357_v8, %v1753_v58 }
 0x322   : > { %v1956_v39 = vpop.f32.mrf.mxu3 }
 0x323   : > { %v1957_v60 = vadd.f32 %v3442_v42, %v1956_v39  ;;  %v1817_v12 = vmax.f32 %v1754_v22, 0.0 }
 0x325   : > { %2052 = vst.msk [vmem:[%s3449_s27] sm:$0xff] %vm281_vm0, %v1957_v60  ;;  %2514 = vmatmul.msk.f32.gmra.mxu3 %vm533_vm1, %v1817_v12  ;;  %v2137_v60 = vpop.permute.xlu0 %2136 }
 0x326   : > { %2213 = vst.msk [vmem:[%s3449_s27] sm:$0xff] %vm2212_vm3, %v2117_v40 }
 0x328   : > { %v1756_v28 = vpop.f32.mrf.mxu2 }
 0x329   : > { %v1757_v27 = vadd.f32 %v3357_v8, %v1756_v28 }
 0x32a   : > { %v1959_v50 = vpop.f32.mrf.mxu3 }
 0x32b   : > { %v1818_v20 = vmax.f32 %v1757_v27, 0.0  ;;  %v1960_v15 = vadd.f32 %v3442_v42, %v1959_v50 }
 0x32d   : > { %2053 = vst.msk [vmem:[%s3449_s27 + $0x8] sm:$0xff] %vm281_vm0, %v1960_v15  ;;  %2515 = vmatmul.msk.f32.gmra.mxu3 %vm533_vm1, %v1818_v20  ;;  %v2139_v20 = vpop.permute.xlu1 %2138 }
 0x32e   : > { %2214 = vst.msk [vmem:[%s3449_s27 + $0x8] sm:$0xff] %vm2212_vm3, %v2119_v36 }
 0x330   : > { %v1759_v25 = vpop.f32.mrf.mxu2 }
 0x331   : > { %v1760_v2 = vadd.f32 %v3357_v8, %v1759_v25 }
 0x332   : > { %v1962_v61 = vpop.f32.mrf.mxu3 }
 0x333   : > { %v1819_v21 = vmax.f32 %v1760_v2, 0.0  ;;  %v1963_v52 = vadd.f32 %v3442_v42, %v1962_v61 }
 0x335   : > { %2054 = vst.msk [vmem:[%s3449_s27 + $0x10] sm:$0xff] %vm281_vm0, %v1963_v52  ;;  %2516 = vmatmul.msk.f32.gmra.mxu3 %vm533_vm1, %v1819_v21  ;;  %v2141_v21 = vpop.permute.xlu2 %2140 }
 0x336   : > { %2215 = vst.msk [vmem:[%s3449_s27 + $0x10] sm:$0xff] %vm2212_vm3, %v2121_v30 }
 0x338   : > { %v1762_v23 = vpop.f32.mrf.mxu2 }
 0x339   : > { %v1763_v16 = vadd.f32 %v3357_v8, %v1762_v23 }
 0x33a   : > { %v1965_v29 = vpop.f32.mrf.mxu3 }
 0x33b   : > { %v1820_v9 = vmax.f32 %v1763_v16, 0.0  ;;  %v1966_v14 = vadd.f32 %v3442_v42, %v1965_v29 }
 0x33d   : > { %2055 = vst.msk [vmem:[%s3449_s27 + $0x18] sm:$0xff] %vm281_vm0, %v1966_v14  ;;  %2517 = vmatmul.msk.f32.gmra.mxu3 %vm533_vm1, %v1820_v9  ;;  %v2143_v9 = vpop.permute.xlu0 %2142 }
 0x33e   : > { %2216 = vst.msk [vmem:[%s3449_s27 + $0x18] sm:$0xff] %vm2212_vm3, %v2123_v43 }
 0x340   : > { %v1765_v47 = vpop.f32.mrf.mxu2 }
 0x341   : > { %v1766_v6 = vadd.f32 %v3357_v8, %v1765_v47 }
 0x342   : > { %v1968_v59 = vpop.f32.mrf.mxu3 }
 0x343   : > { %v1821_v38 = vmax.f32 %v1766_v6, 0.0  ;;  %v1969_v41 = vadd.f32 %v3442_v42, %v1968_v59 }
 0x345   : > { %2056 = vst.msk [vmem:[%s3449_s27 + $0x20] sm:$0xff] %vm281_vm0, %v1969_v41  ;;  %2518 = vmatmul.msk.f32.gmra.mxu3 %vm533_vm1, %v1821_v38  ;;  %v2145_v38 = vpop.permute.xlu1 %2144 }
 0x346   : > { %2217 = vst.msk [vmem:[%s3449_s27 + $0x20] sm:$0xff] %vm2212_vm3, %v2125_v35 }
 0x348   : > { %v1768_v44 = vpop.f32.mrf.mxu2 }
 0x349   : > { %v1769_v0 = vadd.f32 %v3357_v8, %v1768_v44 }
 0x34a   : > { %v1971_v32 = vpop.f32.mrf.mxu3 }
 0x34b   : > { %v1822_v10 = vmax.f32 %v1769_v0, 0.0  ;;  %v1972_v13 = vadd.f32 %v3442_v42, %v1971_v32 }
 0x34d   : > { %2057 = vst.msk [vmem:[%s3449_s27 + $0x28] sm:$0xff] %vm281_vm0, %v1972_v13  ;;  %2519 = vmatmul.msk.f32.gmra.mxu3 %vm533_vm1, %v1822_v10  ;;  %v2147_v10 = vpop.permute.xlu2 %2146 }
 0x34e   : > { %2218 = vst.msk [vmem:[%s3449_s27 + $0x28] sm:$0xff] %vm2212_vm3, %v2127_v46 }
 0x350   : > { %v1771_v62 = vpop.f32.mrf.mxu2 }
 0x351   : > { %v1772_v31 = vadd.f32 %v3357_v8, %v1771_v62  ;;  %v2149_v62 = vpop.permute.xlu0 %2148 }
 0x352   : > { %v1974_v17 = vpop.f32.mrf.mxu3 }
 0x353   : > { %v1823_v4 = vmax.f32 %v1772_v31, 0.0  ;;  %v1975_v24 = vadd.f32 %v3442_v42, %v1974_v17  ;;  %v2151_v17 = vpop.permute.xlu1 %2150 }
 0x355   : > { %2058 = vst.msk [vmem:[%s3449_s27 + $0x30] sm:$0xff] %vm281_vm0, %v1975_v24  ;;  %2520 = vmatmul.msk.f32.gmra.mxu3 %vm533_vm1, %v1823_v4 }
 0x356   : > { %2219 = vst.msk [vmem:[%s3449_s27 + $0x30] sm:$0xff] %vm2212_vm3, %v2129_v45  ;;  %v2153_v45 = vpop.permute.xlu2 %2152 }
 0x358   : > { %v1774_v53 = vpop.f32.mrf.mxu2 }
 0x359   : > { %v1775_v54 = vadd.f32 %v3357_v8, %v1774_v53 }
 0x35a   : > { %v1977_v48 = vpop.f32.mrf.mxu3 }
 0x35b   : > { %v1824_v33 = vmax.f32 %v1775_v54, 0.0  ;;  %v1978_v37 = vadd.f32 %v3442_v42, %v1977_v48  ;;  %v2155_v48 = vpop.permute.xlu0 %2154 }
 0x35d   : > { %2059 = vst.msk [vmem:[%s3449_s27 + $0x38] sm:$0xff] %vm281_vm0, %v1978_v37  ;;  %2521 = vmatmul.msk.f32.gmra.mxu3 %vm533_vm1, %v1824_v33 }
 0x35e   : > { %2220 = vst.msk [vmem:[%s3449_s27 + $0x38] sm:$0xff] %vm2212_vm3, %v2131_v11  ;;  %v2157_v11 = vpop.permute.xlu1 %2156 }
 0x360   : > { %v1777_v18 = vpop.f32.mrf.mxu2 }
 0x361   : > { %v1778_v34 = vadd.f32 %v3357_v8, %v1777_v18 }
 0x362   : > { %v1980_v55 = vpop.f32.mrf.mxu3 }
 0x363   : > { %v1825_v56 = vmax.f32 %v1778_v34, 0.0  ;;  %v1981_v51 = vadd.f32 %v3442_v42, %v1980_v55  ;;  %v2159_v55 = vpop.permute.xlu2 %2158 }
 0x365   : > { %2060 = vst.msk [vmem:[%s3449_s27 + $0x40] sm:$0xff] %vm281_vm0, %v1981_v51  ;;  %2522 = vmatmul.msk.f32.gmra.mxu3 %vm533_vm1, %v1825_v56 }
 0x366   : > { %2221 = vst.msk [vmem:[%s3449_s27 + $0x40] sm:$0xff] %vm2212_vm3, %v2133_v63  ;;  %v2161_v63 = vpop.permute.xlu0 %2160 }
 0x368   : > { %v1780_v1 = vpop.f32.mrf.mxu2 }
 0x369   : > { %v1781_v49 = vadd.f32 %v3357_v8, %v1780_v1 }
 0x36a   : > { %v1983_v26 = vpop.f32.mrf.mxu3 }
 0x36b   : > { %v1826_v3 = vmax.f32 %v1781_v49, 0.0  ;;  %v1984_v19 = vadd.f32 %v3442_v42, %v1983_v26  ;;  %v2163_v26 = vpop.permute.xlu1 %2162 }
 0x36d   : > { %2061 = vst.msk [vmem:[%s3449_s27 + $0x48] sm:$0xff] %vm281_vm0, %v1984_v19  ;;  %2523 = vmatmul.msk.f32.gmra.mxu3 %vm533_vm1, %v1826_v3 }
 0x36e   : > { %2222 = vst.msk [vmem:[%s3449_s27 + $0x48] sm:$0xff] %vm2212_vm3, %v2135_v5  ;;  %v2165_v5 = vpop.permute.xlu2 %2164 }
 0x370   : > { %v1783_v57 = vpop.f32.mrf.mxu2 }
 0x371   : > { %v1784_v7 = vadd.f32 %v3357_v8, %v1783_v57 }
 0x372   : > { %v1986_v58 = vpop.f32.mrf.mxu3 }
 0x373   : > { %v1827_v22 = vmax.f32 %v1784_v7, 0.0  ;;  %v1987_v39 = vadd.f32 %v3442_v42, %v1986_v58  ;;  %v2167_v58 = vpop.permute.xlu0 %2166 }
 0x375   : > { %2062 = vst.msk [vmem:[%s3449_s27 + $0x50] sm:$0xff] %vm281_vm0, %v1987_v39  ;;  %2524 = vmatmul.msk.f32.gmra.mxu3 %vm533_vm1, %v1827_v22 }
 0x376   : > { %2223 = vst.msk [vmem:[%s3449_s27 + $0x50] sm:$0xff] %vm2212_vm3, %v2137_v60  ;;  %v2169_v60 = vpop.permute.xlu1 %2168 }
 0x378   : > { %v1786_v12 = vpop.f32.mrf.mxu2 }
 0x379   : > { %v1787_v40 = vadd.f32 %v3357_v8, %v1786_v12 }
 0x37a   : > { %v1989_v28 = vpop.f32.mrf.mxu3 }
 0x37b   : > { %v1828_v27 = vmax.f32 %v1787_v40, 0.0  ;;  %v1990_v50 = vadd.f32 %v3442_v42, %v1989_v28  ;;  %v2171_v28 = vpop.permute.xlu2 %2170 }
 0x37d   : > { %2063 = vst.msk [vmem:[%s3449_s27 + $0x58] sm:$0xff] %vm281_vm0, %v1990_v50  ;;  %2525 = vmatmul.msk.f32.gmra.mxu3 %vm533_vm1, %v1828_v27 }
 0x37e   : > { %2224 = vst.msk [vmem:[%s3449_s27 + $0x58] sm:$0xff] %vm2212_vm3, %v2139_v20  ;;  %v2173_v20 = vpop.permute.xlu0 %2172 }
 0x380   : > { %v1789_v15 = vpop.f32.mrf.mxu2 }
 0x381   : > { %v1790_v36 = vadd.f32 %v3357_v8, %v1789_v15 }
 0x382   : > { %v1992_v25 = vpop.f32.mrf.mxu3 }
 0x383   : > { %v1829_v2 = vmax.f32 %v1790_v36, 0.0  ;;  %v1993_v61 = vadd.f32 %v3442_v42, %v1992_v25  ;;  %v2175_v25 = vpop.permute.xlu1 %2174 }
 0x385   : > { %2064 = vst.msk [vmem:[%s3449_s27 + $0x60] sm:$0xff] %vm281_vm0, %v1993_v61  ;;  %2526 = vmatmul.msk.f32.gmra.mxu3 %vm533_vm1, %v1829_v2 }
 0x386   : > { %2225 = vst.msk [vmem:[%s3449_s27 + $0x60] sm:$0xff] %vm2212_vm3, %v2141_v21  ;;  %v2177_v21 = vpop.permute.xlu2 %2176 }
 0x388   : > { %v1792_v52 = vpop.f32.mrf.mxu2 }
 0x389   : > { %v1793_v30 = vadd.f32 %v3357_v8, %v1792_v52 }
 0x38a   : > { %v1995_v23 = vpop.f32.mrf.mxu3 }
 0x38b   : > { %v1830_v16 = vmax.f32 %v1793_v30, 0.0  ;;  %v1996_v29 = vadd.f32 %v3442_v42, %v1995_v23  ;;  %v2179_v23 = vpop.permute.xlu0 %2178 }
 0x38d   : > { %2065 = vst.msk [vmem:[%s3449_s27 + $0x68] sm:$0xff] %vm281_vm0, %v1996_v29  ;;  %2527 = vmatmul.msk.f32.gmra.mxu3 %vm533_vm1, %v1830_v16 }
 0x38e   : > { %2226 = vst.msk [vmem:[%s3449_s27 + $0x68] sm:$0xff] %vm2212_vm3, %v2143_v9 }
 0x390   : > { %v1795_v14 = vpop.f32.mrf.mxu2 }
 0x391   : > { %v1796_v43 = vadd.f32 %v3357_v8, %v1795_v14 }
 0x392   : > { %v1998_v47 = vpop.f32.mrf.mxu3 }
 0x393   : > { %v1831_v6 = vmax.f32 %v1796_v43, 0.0  ;;  %v1999_v59 = vadd.f32 %v3442_v42, %v1998_v47 }
 0x395   : > { %2066 = vst.msk [vmem:[%s3449_s27 + $0x70] sm:$0xff] %vm281_vm0, %v1999_v59  ;;  %2528 = vmatmul.msk.f32.gmra.mxu3 %vm533_vm1, %v1831_v6 }
 0x396   : > { %2227 = vst.msk [vmem:[%s3449_s27 + $0x70] sm:$0xff] %vm2212_vm3, %v2145_v38 }
 0x398   : > { %v1798_v41 = vpop.f32.mrf.mxu2 }
 0x399   : > { %v1799_v35 = vadd.f32 %v3357_v8, %v1798_v41 }
 0x39b   : > { %v1832_v44 = vmax.f32 %v1799_v35, 0.0 }
 0x39d   : > { %2529 = vmatmul.msk.f32.gmra.mxu3 %vm533_vm1, %v1832_v44 }
 0x3a0   : > { %v2001_v0 = vpop.f32.mrf.mxu3 }
 0x3a1   : > { %v2002_v32 = vadd.f32 %v3442_v42, %v2001_v0 }
 0x3a3   : > { %2067 = vst.msk [vmem:[%s3449_s27 + $0x78] sm:$0xff] %vm281_vm0, %v2002_v32 }
 0x3a4   : > { %2228 = vst.msk [vmem:[%s3449_s27 + $0x78] sm:$0xff] %vm2212_vm3, %v2147_v10 }
 0x3a8   : > { %v2004_v13 = vpop.f32.mrf.mxu3 }
 0x3a9   : > { %v2005_v46 = vadd.f32 %v3442_v42, %v2004_v13 }
 0x3ab   : > { %2068 = vst.msk [vmem:[%s3449_s27 + $0x80] sm:$0xff] %vm281_vm0, %v2005_v46 }
 0x3ac   : > { %2229 = vst.msk [vmem:[%s3449_s27 + $0x80] sm:$0xff] %vm2212_vm3, %v2149_v62 }
 0x3b0   : > { %v2007_v8 = vpop.f32.mrf.mxu3 }
 0x3b1   : > { %v2008_v31 = vadd.f32 %v3442_v42, %v2007_v8 }
 0x3b3   : > { %2069 = vst.msk [vmem:[%s3449_s27 + $0x88] sm:$0xff] %vm281_vm0, %v2008_v31 }
 0x3b4   : > { %2230 = vst.msk [vmem:[%s3449_s27 + $0x88] sm:$0xff] %vm2212_vm3, %v2151_v17 }
 0x3b8   : > { %v2010_v4 = vpop.f32.mrf.mxu3 }
 0x3b9   : > { %v2011_v24 = vadd.f32 %v3442_v42, %v2010_v4 }
 0x3bb   : > { %2070 = vst.msk [vmem:[%s3449_s27 + $0x90] sm:$0xff] %vm281_vm0, %v2011_v24 }
 0x3bc   : > { %2231 = vst.msk [vmem:[%s3449_s27 + $0x90] sm:$0xff] %vm2212_vm3, %v2153_v45 }
 0x3c0   : > { %v2013_v53 = vpop.f32.mrf.mxu3 }
 0x3c1   : > { %v2014_v54 = vadd.f32 %v3442_v42, %v2013_v53 }
 0x3c3   : > { %2071 = vst.msk [vmem:[%s3449_s27 + $0x98] sm:$0xff] %vm281_vm0, %v2014_v54 }
 0x3c4   : > { %2232 = vst.msk [vmem:[%s3449_s27 + $0x98] sm:$0xff] %vm2212_vm3, %v2155_v48 }
 0x3c8   : > { %v2016_v33 = vpop.f32.mrf.mxu3 }
 0x3c9   : > { %v2017_v37 = vadd.f32 %v3442_v42, %v2016_v33 }
 0x3cb   : > { %2072 = vst.msk [vmem:[%s3449_s27 + $0xa0] sm:$0xff] %vm281_vm0, %v2017_v37 }
 0x3cc   : > { %2233 = vst.msk [vmem:[%s3449_s27 + $0xa0] sm:$0xff] %vm2212_vm3, %v2157_v11 }
 0x3d0   : > { %v2019_v18 = vpop.f32.mrf.mxu3 }
 0x3d1   : > { %v2020_v34 = vadd.f32 %v3442_v42, %v2019_v18 }
 0x3d3   : > { %2073 = vst.msk [vmem:[%s3449_s27 + $0xa8] sm:$0xff] %vm281_vm0, %v2020_v34 }
 0x3d4   : > { %2234 = vst.msk [vmem:[%s3449_s27 + $0xa8] sm:$0xff] %vm2212_vm3, %v2159_v55 }
 0x3d8   : > { %v2022_v56 = vpop.f32.mrf.mxu3 }
 0x3d9   : > { %v2023_v51 = vadd.f32 %v3442_v42, %v2022_v56 }
 0x3db   : > { %2074 = vst.msk [vmem:[%s3449_s27 + $0xb0] sm:$0xff] %vm281_vm0, %v2023_v51 }
 0x3dc   : > { %2235 = vst.msk [vmem:[%s3449_s27 + $0xb0] sm:$0xff] %vm2212_vm3, %v2161_v63 }
 0x3e0   : > { %v2025_v1 = vpop.f32.mrf.mxu3 }
 0x3e1   : > { %v2026_v49 = vadd.f32 %v3442_v42, %v2025_v1 }
 0x3e3   : > { %2075 = vst.msk [vmem:[%s3449_s27 + $0xb8] sm:$0xff] %vm281_vm0, %v2026_v49 }
 0x3e4   : > { %2236 = vst.msk [vmem:[%s3449_s27 + $0xb8] sm:$0xff] %vm2212_vm3, %v2163_v26 }
 0x3e8   : > { %v2028_v3 = vpop.f32.mrf.mxu3 }
 0x3e9   : > { %v2029_v19 = vadd.f32 %v3442_v42, %v2028_v3 }
 0x3eb   : > { %2076 = vst.msk [vmem:[%s3449_s27 + $0xc0] sm:$0xff] %vm281_vm0, %v2029_v19 }
 0x3ec   : > { %2237 = vst.msk [vmem:[%s3449_s27 + $0xc0] sm:$0xff] %vm2212_vm3, %v2165_v5 }
 0x3f0   : > { %v2031_v57 = vpop.f32.mrf.mxu3 }
 0x3f1   : > { %v2032_v7 = vadd.f32 %v3442_v42, %v2031_v57 }
 0x3f3   : > { %2077 = vst.msk [vmem:[%s3449_s27 + $0xc8] sm:$0xff] %vm281_vm0, %v2032_v7 }
 0x3f4   : > { %2238 = vst.msk [vmem:[%s3449_s27 + $0xc8] sm:$0xff] %vm2212_vm3, %v2167_v58 }
 0x3f8   : > { %v2034_v22 = vpop.f32.mrf.mxu3 }
 0x3f9   : > { %v2035_v39 = vadd.f32 %v3442_v42, %v2034_v22 }
 0x3fb   : > { %2078 = vst.msk [vmem:[%s3449_s27 + $0xd0] sm:$0xff] %vm281_vm0, %v2035_v39 }
 0x3fc   : > { %2239 = vst.msk [vmem:[%s3449_s27 + $0xd0] sm:$0xff] %vm2212_vm3, %v2169_v60 }
 0x400   : > { %v2037_v12 = vpop.f32.mrf.mxu3 }
 0x401   : > { %v2038_v40 = vadd.f32 %v3442_v42, %v2037_v12 }
 0x403   : > { %2079 = vst.msk [vmem:[%s3449_s27 + $0xd8] sm:$0xff] %vm281_vm0, %v2038_v40 }
 0x404   : > { %2240 = vst.msk [vmem:[%s3449_s27 + $0xd8] sm:$0xff] %vm2212_vm3, %v2171_v28 }
 0x408   : > { %v2040_v27 = vpop.f32.mrf.mxu3 }
 0x409   : > { %v2041_v50 = vadd.f32 %v3442_v42, %v2040_v27 }
 0x40b   : > { %2080 = vst.msk [vmem:[%s3449_s27 + $0xe0] sm:$0xff] %vm281_vm0, %v2041_v50 }
 0x40c   : > { %2241 = vst.msk [vmem:[%s3449_s27 + $0xe0] sm:$0xff] %vm2212_vm3, %v2173_v20 }
 0x410   : > { %v2043_v15 = vpop.f32.mrf.mxu3 }
 0x411   : > { %v2044_v36 = vadd.f32 %v3442_v42, %v2043_v15 }
 0x413   : > { %2081 = vst.msk [vmem:[%s3449_s27 + $0xe8] sm:$0xff] %vm281_vm0, %v2044_v36 }
 0x414   : > { %2242 = vst.msk [vmem:[%s3449_s27 + $0xe8] sm:$0xff] %vm2212_vm3, %v2175_v25 }
 0x418   : > { %v2046_v2 = vpop.f32.mrf.mxu3 }
 0x419   : > { %v2047_v61 = vadd.f32 %v3442_v42, %v2046_v2 }
 0x41b   : > { %2082 = vst.msk [vmem:[%s3449_s27 + $0xf0] sm:$0xff] %vm281_vm0, %v2047_v61 }
 0x41c   : > { %2243 = vst.msk [vmem:[%s3449_s27 + $0xf0] sm:$0xff] %vm2212_vm3, %v2177_v21 }
 0x420   : > { %v2049_v52 = vpop.f32.mrf.mxu3 }
 0x421   : > { %v2050_v30 = vadd.f32 %v3442_v42, %v2049_v52 }
 0x423   : > { %2083 = vst.msk [vmem:[%s3449_s27 + $0xf8] sm:$0xff] %vm281_vm0, %v2050_v30 }
 0x424   : > { %2244 = vst.msk [vmem:[%s3449_s27 + $0xf8] sm:$0xff] %vm2212_vm3, %v2179_v23 }
 0x425 PF: > { %s14_s15 = sadd.s32 1, %s2619_s15  }
 0x426   : > { %p11_p4 = scmp.ge.s32.totalorder %s14_s15, 4  }
 0x428   :  { %13 = sbr.rel (!%p11_p4) target bundleno = 1 (0x1), region = 72 }

</bundles_post_ra>
